<compile_context>
chip_gen: v5e
topology: v5e:2x2
jax: 0.10.0
libtpu: 0.0.40
codegen_flags: <defaults>
</compile_context>

<pallas_src>
import jax
import jax.numpy as jnp
from jax import lax
from jax.experimental import pallas as pl
from jax.experimental.pallas import tpu as pltpu

_EPS = 1e-5


def _make_block_kernel(layers, c0, growth, H, W):
    """Builds the fused dense-block kernel for `layers` units."""
    HW = H * W

    def kernel(*refs):
        x_ref = refs[0]
        masks_ref = refs[1]                       # (9, HW) bf16 border masks
        unit_refs = refs[2:2 + 5 * layers]
        out_ref = refs[2 + 5 * layers]

        # The output block doubles as the VMEM-resident concat buffer.
        out_ref[0, 0:c0, :] = x_ref[0]

        cin = c0
        for u in range(layers):
            s1, b1, w1s, b2, w2 = unit_refs[5 * u:5 * u + 5]

            # BN1 (folded affine) + ReLU, f32 elementwise.
            xin = out_ref[0, 0:cin, :]                            # (cin, HW)
            h0 = jnp.maximum(xin * s1[...] + b1[...], 0.0)

            # 1x1 conv with BN2 scale pre-folded into w1s; bias + ReLU.
            t = jnp.dot(w1s[...], h0.astype(jnp.bfloat16),
                        preferred_element_type=jnp.float32)       # (cmid, HW)
            t = jnp.maximum(t + b2[...], 0.0)
            t_bf = t.astype(jnp.bfloat16)

            # im2col: 9 shifted+masked copies stacked on sublanes.
            # (jnp.roll lowers to a lane rotate/concat; masks zero the
            #  out-of-image taps of the SAME-padded 3x3 conv.)
            patches = []
            k = 0
            for dh in (-1, 0, 1):
                for dw in (-1, 0, 1):
                    shift = dh * W + dw
                    p = t_bf if shift == 0 else jnp.roll(t_bf, -shift, axis=1)
                    if dh != 0 or dw != 0:
                        p = p * masks_ref[k:k + 1, :]             # (1,HW) bcast
                    patches.append(p)
                    k += 1
            slab = jnp.concatenate(patches, axis=0)               # (9*cmid, HW)

            # 3x3 conv as ONE long-K MXU matmul, channel-major output.
            y = jnp.dot(w2[...], slab,
                        preferred_element_type=jnp.float32)       # (growth, HW)

            # "concat": append new features to the VMEM-resident feature map.
            out_ref[0, cin:cin + growth, :] = y
            cin += growth

    return kernel


def _make_tap_masks(H, W):
    """(9, H*W) {0,1} masks: validity of each 3x3 tap under SAME padding."""
    row = jnp.arange(H * W, dtype=jnp.int32) // W
    col = jnp.arange(H * W, dtype=jnp.int32) % W
    masks = []
    for dh in (-1, 0, 1):
        for dw in (-1, 0, 1):
            ok = ((row + dh >= 0) & (row + dh < H)
                  & (col + dw >= 0) & (col + dw < W))
            masks.append(ok)
    return jnp.stack(masks, axis=0).astype(jnp.bfloat16)


def q_dense_block(x_nchw, units_params):
    """Q_DenseBlock.forward (float semantics). x: (N, C, H, W) NCHW."""
    N, C0, H, W = x_nchw.shape
    layers = len(units_params)
    growth = units_params[0][4].shape[0]          # w2 rows
    c_final = C0 + layers * growth
    HW = H * W

    x = x_nchw.reshape(N, C0, HW)                 # NCHW is already channel-major
    tap_masks = _make_tap_masks(H, W)
    flat_params = [a for p in units_params for a in p]

    in_specs = [pl.BlockSpec((1, C0, HW), lambda n: (n, 0, 0)),
                pl.BlockSpec(tap_masks.shape, lambda n: (0, 0))]
    for a in flat_params:
        # Full-array blocks with constant index_map: fetched once, reused
        # across grid steps (block index never changes).
        in_specs.append(pl.BlockSpec(a.shape, lambda n: (0, 0)))

    kernel = _make_block_kernel(layers, C0, growth, H, W)
    out = pl.pallas_call(
        kernel,
        out_shape=jax.ShapeDtypeStruct((N, c_final, HW), jnp.float32),
        grid_spec=pltpu.PrefetchScalarGridSpec(
            num_scalar_prefetch=0,
            grid=(N,),
            in_specs=in_specs,
            out_specs=pl.BlockSpec((1, c_final, HW), lambda n: (n, 0, 0)),
        ),
        compiler_params=pltpu.CompilerParams(
            dimension_semantics=("parallel",),
            vmem_limit_bytes=32 * 1024 * 1024),
    )(x, tap_masks, *flat_params)

    # TODO(synk): QuantAct / QuantBn integer scale propagation is not
    # reproducible without the quant module definitions; float semantics are
    # implemented and a unit scale is returned.
    act_scaling_factor = jnp.float32(1.0)
    return out.reshape(N, c_final, H, W), act_scaling_factor


def init_unit_params(key, cin, growth):
    """Deterministic synthetic params for one Q_DenseUnit, kernel layout."""
    cmid = 4 * growth
    ks = jax.random.split(key, 10)
    # BN1 over cin channels
    g1 = jax.random.uniform(ks[0], (cin,), jnp.float32, 0.5, 1.5)
    be1 = 0.1 * jax.random.normal(ks[1], (cin,), jnp.float32)
    m1 = 0.1 * jax.random.normal(ks[2], (cin,), jnp.float32)
    v1 = jax.random.uniform(ks[3], (cin,), jnp.float32, 0.5, 1.5)
    # conv1: 1x1, torch OIHW (cmid, cin, 1, 1)
    w1 = jax.random.normal(ks[4], (cmid, cin, 1, 1), jnp.float32) / jnp.sqrt(cin)
    # BN2 over cmid channels
    g2 = jax.random.uniform(ks[5], (cmid,), jnp.float32, 0.5, 1.5)
    be2 = 0.1 * jax.random.normal(ks[6], (cmid,), jnp.float32)
    m2 = 0.1 * jax.random.normal(ks[7], (cmid,), jnp.float32)
    v2 = jax.random.uniform(ks[8], (cmid,), jnp.float32, 0.5, 1.5)
    # conv2: 3x3, torch OIHW (growth, cmid, 3, 3)
    w2 = jax.random.normal(ks[9], (growth, cmid, 3, 3),
                           jnp.float32) / jnp.sqrt(9 * cmid)

    # Fold BN1 to a per-channel affine; fold BN2 scale into the 1x1 weights.
    s1 = g1 / jnp.sqrt(v1 + _EPS)
    b1 = be1 - m1 * s1
    s2 = g2 / jnp.sqrt(v2 + _EPS)
    b2 = be2 - m2 * s2

    w1s = (w1[:, :, 0, 0] * s2[:, None]).astype(jnp.bfloat16)     # (cmid, cin)
    # (growth, cmid, 3, 3) -> (growth, 3, 3, cmid) -> (growth, 9*cmid),
    # columns ordered tap-major (kh, kw) then channel, matching the kernel.
    w2m = jnp.transpose(w2, (0, 2, 3, 1)).reshape(growth, 9 * cmid)
    w2m = w2m.astype(jnp.bfloat16)

    return (s1.reshape(cin, 1), b1.reshape(cin, 1), w1s,
            b2.reshape(cmid, 1), w2m)


def _ref_unit(x_nhwc, p):
    """Pure-JAX f32 reference of one unit (same folded params as the kernel)."""
    s1, b1, w1s, b2, w2m = p
    growth = w2m.shape[0]
    cmid = w1s.shape[0]
    h = jnp.maximum(x_nhwc * s1[:, 0] + b1[:, 0], 0.0)
    t = jnp.einsum('nhwc,mc->nhwm', h, w1s.astype(jnp.float32))
    t = jnp.maximum(t + b2[:, 0], 0.0)
    w_hwio = jnp.transpose(
        w2m.astype(jnp.float32).reshape(growth, 3, 3, cmid), (1, 2, 3, 0))
    return lax.conv_general_dilated(
        t, w_hwio, window_strides=(1, 1), padding='SAME',
        dimension_numbers=('NHWC', 'HWIO', 'NHWC'))


if __name__ == "__main__":
    key = jax.random.PRNGKey(0)
    N, C0, H, W = 2, 4, 16, 16
    growth, layers = 4, 2

    kx, kp = jax.random.split(key)
    x = jax.random.normal(kx, (N, C0, H, W), jnp.float32)

    units_params = []
    cin = C0
    for _ in range(layers):
        kp, ku = jax.random.split(kp)
        units_params.append(init_unit_params(ku, cin, growth))
        cin += growth

    out, sf = q_dense_block(x, units_params)
    out = jax.block_until_ready(out)
    assert out.shape == (N, C0 + layers * growth, H, W)

    # Pure-JAX f32 reference of the same float semantics.  The kernel casts
    # matmul operands to bf16 (f32 accumulation), so tolerance is relaxed.
    xr = jnp.transpose(x, (0, 2, 3, 1))
    for p in units_params:
        xr = jnp.concatenate([xr, _ref_unit(xr, p)], axis=-1)
    xr = jnp.transpose(xr, (0, 3, 1, 2))
    max_err = jnp.max(jnp.abs(out - xr))
    assert jnp.allclose(out, xr, atol=2e-2, rtol=2e-2), (
        f"mismatch vs reference, max abs err = {max_err}")

    print("KERNEL_OK")
</pallas_src>

<mosaic_0001>
module attributes {stable_mosaic.version = 11 : i64} {
  func.func @kernel(%arg0: i32, %arg1: memref<1x4x256xf32, #tpu.memory_space<vmem>>, %arg2: memref<9x256xbf16, #tpu.memory_space<vmem>>, %arg3: memref<4x1xf32, #tpu.memory_space<vmem>>, %arg4: memref<4x1xf32, #tpu.memory_space<vmem>>, %arg5: memref<16x4xbf16, #tpu.memory_space<vmem>>, %arg6: memref<16x1xf32, #tpu.memory_space<vmem>>, %arg7: memref<4x144xbf16, #tpu.memory_space<vmem>>, %arg8: memref<8x1xf32, #tpu.memory_space<vmem>>, %arg9: memref<8x1xf32, #tpu.memory_space<vmem>>, %arg10: memref<16x8xbf16, #tpu.memory_space<vmem>>, %arg11: memref<16x1xf32, #tpu.memory_space<vmem>>, %arg12: memref<4x144xbf16, #tpu.memory_space<vmem>>, %arg13: memref<1x12x256xf32, #tpu.memory_space<vmem>>) attributes {dimension_semantics = [#tpu.dimension_semantics<parallel>], iteration_bounds = array<i64: 2>, scalar_prefetch = 0 : i64, scratch_operands = 0 : i64, tpu.core_type = #tpu.core_type<tc>, window_params = [{transform_indices = @transform_0, window_bounds = array<i64: 1, 4, 256>}, {pipeline_mode = #tpu.pipeline_mode<synchronous>, transform_indices = @transform_1, window_bounds = array<i64: 9, 256>}, {pipeline_mode = #tpu.pipeline_mode<synchronous>, transform_indices = @transform_2, window_bounds = array<i64: 4, 1>}, {pipeline_mode = #tpu.pipeline_mode<synchronous>, transform_indices = @transform_3, window_bounds = array<i64: 4, 1>}, {pipeline_mode = #tpu.pipeline_mode<synchronous>, transform_indices = @transform_4, window_bounds = array<i64: 16, 4>}, {pipeline_mode = #tpu.pipeline_mode<synchronous>, transform_indices = @transform_5, window_bounds = array<i64: 16, 1>}, {pipeline_mode = #tpu.pipeline_mode<synchronous>, transform_indices = @transform_6, window_bounds = array<i64: 4, 144>}, {pipeline_mode = #tpu.pipeline_mode<synchronous>, transform_indices = @transform_7, window_bounds = array<i64: 8, 1>}, {pipeline_mode = #tpu.pipeline_mode<synchronous>, transform_indices = @transform_8, window_bounds = array<i64: 8, 1>}, {pipeline_mode = #tpu.pipeline_mode<synchronous>, transform_indices = @transform_9, window_bounds = array<i64: 16, 8>}, {pipeline_mode = #tpu.pipeline_mode<synchronous>, transform_indices = @transform_10, window_bounds = array<i64: 16, 1>}, {pipeline_mode = #tpu.pipeline_mode<synchronous>, transform_indices = @transform_11, window_bounds = array<i64: 4, 144>}, {transform_indices = @transform_12, window_bounds = array<i64: 1, 12, 256>}]} {
    %c0 = arith.constant 0 : index
    %c0_0 = arith.constant 0 : index
    %c0_1 = arith.constant 0 : index
    %0 = vector.load %arg1[%c0, %c0_0, %c0_1] : memref<1x4x256xf32, #tpu.memory_space<vmem>>, vector<1x4x256xf32>
    %1 = vector.shape_cast %0 : vector<1x4x256xf32> to vector<4x256xf32>
    %c0_2 = arith.constant 0 : index
    %c0_3 = arith.constant 0 : index
    %c0_4 = arith.constant 0 : index
    %2 = vector.load %arg13[%c0_2, %c0_3, %c0_4] : memref<1x12x256xf32, #tpu.memory_space<vmem>>, vector<1x4x256xf32>
    %3 = vector.shape_cast %2 : vector<1x4x256xf32> to vector<4x256xf32>
    %4 = vector.shape_cast %1 : vector<4x256xf32> to vector<1x4x256xf32>
    tpu.vector_store %arg13[%c0_2, %c0_3, %c0_4], %4 {strides = array<i32>} : memref<1x12x256xf32, #tpu.memory_space<vmem>>, vector<1x4x256xf32>,
    %c0_5 = arith.constant 0 : index
    %c0_6 = arith.constant 0 : index
    %c0_7 = arith.constant 0 : index
    %5 = vector.load %arg13[%c0_5, %c0_6, %c0_7] : memref<1x12x256xf32, #tpu.memory_space<vmem>>, vector<1x4x256xf32>
    %6 = vector.shape_cast %5 : vector<1x4x256xf32> to vector<4x256xf32>
    %c0_8 = arith.constant 0 : index
    %c0_9 = arith.constant 0 : index
    %7 = vector.load %arg3[%c0_8, %c0_9] : memref<4x1xf32, #tpu.memory_space<vmem>>, vector<4x1xf32>
    %8 = vector.broadcast %7 : vector<4x1xf32> to vector<4x256xf32>
    %9 = arith.mulf %6, %8 : vector<4x256xf32>
    %c0_10 = arith.constant 0 : index
    %c0_11 = arith.constant 0 : index
    %10 = vector.load %arg4[%c0_10, %c0_11] : memref<4x1xf32, #tpu.memory_space<vmem>>, vector<4x1xf32>
    %11 = vector.broadcast %10 : vector<4x1xf32> to vector<4x256xf32>
    %12 = arith.addf %9, %11 : vector<4x256xf32>
    %cst = arith.constant 0.000000e+00 : f32
    %13 = vector.broadcast %cst : f32 to vector<4x256xf32>
    %14 = arith.maximumf %12, %13 : vector<4x256xf32>
    %c0_12 = arith.constant 0 : index
    %c0_13 = arith.constant 0 : index
    %15 = vector.load %arg5[%c0_12, %c0_13] : memref<16x4xbf16, #tpu.memory_space<vmem>>, vector<16x4xbf16>
    %16 = arith.truncf %14 : vector<4x256xf32> to vector<4x256xbf16>
    %cst_14 = arith.constant dense<0.000000e+00> : vector<16x256xf32>
    %17 = tpu.matmul %15, %16, %cst_14 {dimension_numbers = #tpu.dot_dimension_numbers<[1], [0], [0], [1], [0, 0, 1, 1], [], []>} : vector<16x4xbf16>, vector<4x256xbf16>, vector<16x256xf32> -> vector<16x256xf32>
    %c0_15 = arith.constant 0 : index
    %c0_16 = arith.constant 0 : index
    %18 = vector.load %arg6[%c0_15, %c0_16] : memref<16x1xf32, #tpu.memory_space<vmem>>, vector<16x1xf32>
    %19 = vector.broadcast %18 : vector<16x1xf32> to vector<16x256xf32>
    %20 = arith.addf %17, %19 : vector<16x256xf32>
    %cst_17 = arith.constant 0.000000e+00 : f32
    %21 = vector.broadcast %cst_17 : f32 to vector<16x256xf32>
    %22 = arith.maximumf %20, %21 : vector<16x256xf32>
    %23 = arith.truncf %22 : vector<16x256xf32> to vector<16x256xbf16>
    %24 = vector.extract_strided_slice %23 {offsets = [0, 239], sizes = [16, 17], strides = [1, 1]} : vector<16x256xbf16> to vector<16x17xbf16>
    %25 = vector.extract_strided_slice %23 {offsets = [0, 0], sizes = [16, 239], strides = [1, 1]} : vector<16x256xbf16> to vector<16x239xbf16>
    %26 = tpu.concatenate %24, %25 in 1 : vector<16x17xbf16>, vector<16x239xbf16> -> vector<16x256xbf16>
    %c0_18 = arith.constant 0 : index
    %c0_19 = arith.constant 0 : index
    %27 = vector.load %arg2[%c0_18, %c0_19] : memref<9x256xbf16, #tpu.memory_space<vmem>>, vector<1x256xbf16>
    %28 = vector.broadcast %27 : vector<1x256xbf16> to vector<16x256xbf16>
    %29 = arith.mulf %26, %28 : vector<16x256xbf16>
    %30 = vector.extract_strided_slice %23 {offsets = [0, 240], sizes = [16, 16], strides = [1, 1]} : vector<16x256xbf16> to vector<16x16xbf16>
    %31 = vector.extract_strided_slice %23 {offsets = [0, 0], sizes = [16, 240], strides = [1, 1]} : vector<16x256xbf16> to vector<16x240xbf16>
    %32 = tpu.concatenate %30, %31 in 1 : vector<16x16xbf16>, vector<16x240xbf16> -> vector<16x256xbf16>
    %c1 = arith.constant 1 : index
    %c0_20 = arith.constant 0 : index
    %33 = vector.load %arg2[%c1, %c0_20] : memref<9x256xbf16, #tpu.memory_space<vmem>>, vector<1x256xbf16>
    %34 = vector.broadcast %33 : vector<1x256xbf16> to vector<16x256xbf16>
    %35 = arith.mulf %32, %34 : vector<16x256xbf16>
    %36 = vector.extract_strided_slice %23 {offsets = [0, 241], sizes = [16, 15], strides = [1, 1]} : vector<16x256xbf16> to vector<16x15xbf16>
    %37 = vector.extract_strided_slice %23 {offsets = [0, 0], sizes = [16, 241], strides = [1, 1]} : vector<16x256xbf16> to vector<16x241xbf16>
    %38 = tpu.concatenate %36, %37 in 1 : vector<16x15xbf16>, vector<16x241xbf16> -> vector<16x256xbf16>
    %c2 = arith.constant 2 : index
    %c0_21 = arith.constant 0 : index
    %39 = vector.load %arg2[%c2, %c0_21] : memref<9x256xbf16, #tpu.memory_space<vmem>>, vector<1x256xbf16>
    %40 = vector.broadcast %39 : vector<1x256xbf16> to vector<16x256xbf16>
    %41 = arith.mulf %38, %40 : vector<16x256xbf16>
    %42 = vector.extract_strided_slice %23 {offsets = [0, 255], sizes = [16, 1], strides = [1, 1]} : vector<16x256xbf16> to vector<16x1xbf16>
    %43 = vector.extract_strided_slice %23 {offsets = [0, 0], sizes = [16, 255], strides = [1, 1]} : vector<16x256xbf16> to vector<16x255xbf16>
    %44 = tpu.concatenate %42, %43 in 1 : vector<16x1xbf16>, vector<16x255xbf16> -> vector<16x256xbf16>
    %c3 = arith.constant 3 : index
    %c0_22 = arith.constant 0 : index
    %45 = vector.load %arg2[%c3, %c0_22] : memref<9x256xbf16, #tpu.memory_space<vmem>>, vector<1x256xbf16>
    %46 = vector.broadcast %45 : vector<1x256xbf16> to vector<16x256xbf16>
    %47 = arith.mulf %44, %46 : vector<16x256xbf16>
    %48 = vector.extract_strided_slice %23 {offsets = [0, 1], sizes = [16, 255], strides = [1, 1]} : vector<16x256xbf16> to vector<16x255xbf16>
    %49 = vector.extract_strided_slice %23 {offsets = [0, 0], sizes = [16, 1], strides = [1, 1]} : vector<16x256xbf16> to vector<16x1xbf16>
    %50 = tpu.concatenate %48, %49 in 1 : vector<16x255xbf16>, vector<16x1xbf16> -> vector<16x256xbf16>
    %c5 = arith.constant 5 : index
    %c0_23 = arith.constant 0 : index
    %51 = vector.load %arg2[%c5, %c0_23] : memref<9x256xbf16, #tpu.memory_space<vmem>>, vector<1x256xbf16>
    %52 = vector.broadcast %51 : vector<1x256xbf16> to vector<16x256xbf16>
    %53 = arith.mulf %50, %52 : vector<16x256xbf16>
    %54 = vector.extract_strided_slice %23 {offsets = [0, 15], sizes = [16, 241], strides = [1, 1]} : vector<16x256xbf16> to vector<16x241xbf16>
    %55 = vector.extract_strided_slice %23 {offsets = [0, 0], sizes = [16, 15], strides = [1, 1]} : vector<16x256xbf16> to vector<16x15xbf16>
    %56 = tpu.concatenate %54, %55 in 1 : vector<16x241xbf16>, vector<16x15xbf16> -> vector<16x256xbf16>
    %c6 = arith.constant 6 : index
    %c0_24 = arith.constant 0 : index
    %57 = vector.load %arg2[%c6, %c0_24] : memref<9x256xbf16, #tpu.memory_space<vmem>>, vector<1x256xbf16>
    %58 = vector.broadcast %57 : vector<1x256xbf16> to vector<16x256xbf16>
    %59 = arith.mulf %56, %58 : vector<16x256xbf16>
    %60 = vector.extract_strided_slice %23 {offsets = [0, 16], sizes = [16, 240], strides = [1, 1]} : vector<16x256xbf16> to vector<16x240xbf16>
    %61 = vector.extract_strided_slice %23 {offsets = [0, 0], sizes = [16, 16], strides = [1, 1]} : vector<16x256xbf16> to vector<16x16xbf16>
    %62 = tpu.concatenate %60, %61 in 1 : vector<16x240xbf16>, vector<16x16xbf16> -> vector<16x256xbf16>
    %c7 = arith.constant 7 : index
    %c0_25 = arith.constant 0 : index
    %63 = vector.load %arg2[%c7, %c0_25] : memref<9x256xbf16, #tpu.memory_space<vmem>>, vector<1x256xbf16>
    %64 = vector.broadcast %63 : vector<1x256xbf16> to vector<16x256xbf16>
    %65 = arith.mulf %62, %64 : vector<16x256xbf16>
    %66 = vector.extract_strided_slice %23 {offsets = [0, 17], sizes = [16, 239], strides = [1, 1]} : vector<16x256xbf16> to vector<16x239xbf16>
    %67 = vector.extract_strided_slice %23 {offsets = [0, 0], sizes = [16, 17], strides = [1, 1]} : vector<16x256xbf16> to vector<16x17xbf16>
    %68 = tpu.concatenate %66, %67 in 1 : vector<16x239xbf16>, vector<16x17xbf16> -> vector<16x256xbf16>
    %c8 = arith.constant 8 : index
    %c0_26 = arith.constant 0 : index
    %69 = vector.load %arg2[%c8, %c0_26] : memref<9x256xbf16, #tpu.memory_space<vmem>>, vector<1x256xbf16>
    %70 = vector.broadcast %69 : vector<1x256xbf16> to vector<16x256xbf16>
    %71 = arith.mulf %68, %70 : vector<16x256xbf16>
    %72 = tpu.concatenate %29, %35, %41, %47, %23, %53, %59, %65, %71 in 0 : vector<16x256xbf16>, vector<16x256xbf16>, vector<16x256xbf16>, vector<16x256xbf16>, vector<16x256xbf16>, vector<16x256xbf16>, vector<16x256xbf16>, vector<16x256xbf16>, vector<16x256xbf16> -> vector<144x256xbf16>
    %c0_27 = arith.constant 0 : index
    %c0_28 = arith.constant 0 : index
    %73 = vector.load %arg7[%c0_27, %c0_28] : memref<4x144xbf16, #tpu.memory_space<vmem>>, vector<4x144xbf16>
    %cst_29 = arith.constant dense<0.000000e+00> : vector<4x256xf32>
    %74 = tpu.matmul %73, %72, %cst_29 {dimension_numbers = #tpu.dot_dimension_numbers<[1], [0], [0], [1], [0, 0, 1, 1], [], []>} : vector<4x144xbf16>, vector<144x256xbf16>, vector<4x256xf32> -> vector<4x256xf32>
    %c0_30 = arith.constant 0 : index
    %c4 = arith.constant 4 : index
    %c0_31 = arith.constant 0 : index
    %75 = vector.load %arg13[%c0_30, %c4, %c0_31] : memref<1x12x256xf32, #tpu.memory_space<vmem>>, vector<1x4x256xf32>
    %76 = vector.shape_cast %75 : vector<1x4x256xf32> to vector<4x256xf32>
    %77 = vector.shape_cast %74 : vector<4x256xf32> to vector<1x4x256xf32>
    tpu.vector_store %arg13[%c0_30, %c4, %c0_31], %77 {strides = array<i32>} : memref<1x12x256xf32, #tpu.memory_space<vmem>>, vector<1x4x256xf32>,
    %c0_32 = arith.constant 0 : index
    %c0_33 = arith.constant 0 : index
    %c0_34 = arith.constant 0 : index
    %78 = vector.load %arg13[%c0_32, %c0_33, %c0_34] : memref<1x12x256xf32, #tpu.memory_space<vmem>>, vector<1x8x256xf32>
    %79 = vector.shape_cast %78 : vector<1x8x256xf32> to vector<8x256xf32>
    %c0_35 = arith.constant 0 : index
    %c0_36 = arith.constant 0 : index
    %80 = vector.load %arg8[%c0_35, %c0_36] : memref<8x1xf32, #tpu.memory_space<vmem>>, vector<8x1xf32>
    %81 = vector.broadcast %80 : vector<8x1xf32> to vector<8x256xf32>
    %82 = arith.mulf %79, %81 : vector<8x256xf32>
    %c0_37 = arith.constant 0 : index
    %c0_38 = arith.constant 0 : index
    %83 = vector.load %arg9[%c0_37, %c0_38] : memref<8x1xf32, #tpu.memory_space<vmem>>, vector<8x1xf32>
    %84 = vector.broadcast %83 : vector<8x1xf32> to vector<8x256xf32>
    %85 = arith.addf %82, %84 : vector<8x256xf32>
    %cst_39 = arith.constant 0.000000e+00 : f32
    %86 = vector.broadcast %cst_39 : f32 to vector<8x256xf32>
    %87 = arith.maximumf %85, %86 : vector<8x256xf32>
    %c0_40 = arith.constant 0 : index
    %c0_41 = arith.constant 0 : index
    %88 = vector.load %arg10[%c0_40, %c0_41] : memref<16x8xbf16, #tpu.memory_space<vmem>>, vector<16x8xbf16>
    %89 = arith.truncf %87 : vector<8x256xf32> to vector<8x256xbf16>
    %cst_42 = arith.constant dense<0.000000e+00> : vector<16x256xf32>
    %90 = tpu.matmul %88, %89, %cst_42 {dimension_numbers = #tpu.dot_dimension_numbers<[1], [0], [0], [1], [0, 0, 1, 1], [], []>} : vector<16x8xbf16>, vector<8x256xbf16>, vector<16x256xf32> -> vector<16x256xf32>
    %c0_43 = arith.constant 0 : index
    %c0_44 = arith.constant 0 : index
    %91 = vector.load %arg11[%c0_43, %c0_44] : memref<16x1xf32, #tpu.memory_space<vmem>>, vector<16x1xf32>
    %92 = vector.broadcast %91 : vector<16x1xf32> to vector<16x256xf32>
    %93 = arith.addf %90, %92 : vector<16x256xf32>
    %cst_45 = arith.constant 0.000000e+00 : f32
    %94 = vector.broadcast %cst_45 : f32 to vector<16x256xf32>
    %95 = arith.maximumf %93, %94 : vector<16x256xf32>
    %96 = arith.truncf %95 : vector<16x256xf32> to vector<16x256xbf16>
    %97 = vector.extract_strided_slice %96 {offsets = [0, 239], sizes = [16, 17], strides = [1, 1]} : vector<16x256xbf16> to vector<16x17xbf16>
    %98 = vector.extract_strided_slice %96 {offsets = [0, 0], sizes = [16, 239], strides = [1, 1]} : vector<16x256xbf16> to vector<16x239xbf16>
    %99 = tpu.concatenate %97, %98 in 1 : vector<16x17xbf16>, vector<16x239xbf16> -> vector<16x256xbf16>
    %c0_46 = arith.constant 0 : index
    %c0_47 = arith.constant 0 : index
    %100 = vector.load %arg2[%c0_46, %c0_47] : memref<9x256xbf16, #tpu.memory_space<vmem>>, vector<1x256xbf16>
    %101 = vector.broadcast %100 : vector<1x256xbf16> to vector<16x256xbf16>
    %102 = arith.mulf %99, %101 : vector<16x256xbf16>
    %103 = vector.extract_strided_slice %96 {offsets = [0, 240], sizes = [16, 16], strides = [1, 1]} : vector<16x256xbf16> to vector<16x16xbf16>
    %104 = vector.extract_strided_slice %96 {offsets = [0, 0], sizes = [16, 240], strides = [1, 1]} : vector<16x256xbf16> to vector<16x240xbf16>
    %105 = tpu.concatenate %103, %104 in 1 : vector<16x16xbf16>, vector<16x240xbf16> -> vector<16x256xbf16>
    %c1_48 = arith.constant 1 : index
    %c0_49 = arith.constant 0 : index
    %106 = vector.load %arg2[%c1_48, %c0_49] : memref<9x256xbf16, #tpu.memory_space<vmem>>, vector<1x256xbf16>
    %107 = vector.broadcast %106 : vector<1x256xbf16> to vector<16x256xbf16>
    %108 = arith.mulf %105, %107 : vector<16x256xbf16>
    %109 = vector.extract_strided_slice %96 {offsets = [0, 241], sizes = [16, 15], strides = [1, 1]} : vector<16x256xbf16> to vector<16x15xbf16>
    %110 = vector.extract_strided_slice %96 {offsets = [0, 0], sizes = [16, 241], strides = [1, 1]} : vector<16x256xbf16> to vector<16x241xbf16>
    %111 = tpu.concatenate %109, %110 in 1 : vector<16x15xbf16>, vector<16x241xbf16> -> vector<16x256xbf16>
    %c2_50 = arith.constant 2 : index
    %c0_51 = arith.constant 0 : index
    %112 = vector.load %arg2[%c2_50, %c0_51] : memref<9x256xbf16, #tpu.memory_space<vmem>>, vector<1x256xbf16>
    %113 = vector.broadcast %112 : vector<1x256xbf16> to vector<16x256xbf16>
    %114 = arith.mulf %111, %113 : vector<16x256xbf16>
    %115 = vector.extract_strided_slice %96 {offsets = [0, 255], sizes = [16, 1], strides = [1, 1]} : vector<16x256xbf16> to vector<16x1xbf16>
    %116 = vector.extract_strided_slice %96 {offsets = [0, 0], sizes = [16, 255], strides = [1, 1]} : vector<16x256xbf16> to vector<16x255xbf16>
    %117 = tpu.concatenate %115, %116 in 1 : vector<16x1xbf16>, vector<16x255xbf16> -> vector<16x256xbf16>
    %c3_52 = arith.constant 3 : index
    %c0_53 = arith.constant 0 : index
    %118 = vector.load %arg2[%c3_52, %c0_53] : memref<9x256xbf16, #tpu.memory_space<vmem>>, vector<1x256xbf16>
    %119 = vector.broadcast %118 : vector<1x256xbf16> to vector<16x256xbf16>
    %120 = arith.mulf %117, %119 : vector<16x256xbf16>
    %121 = vector.extract_strided_slice %96 {offsets = [0, 1], sizes = [16, 255], strides = [1, 1]} : vector<16x256xbf16> to vector<16x255xbf16>
    %122 = vector.extract_strided_slice %96 {offsets = [0, 0], sizes = [16, 1], strides = [1, 1]} : vector<16x256xbf16> to vector<16x1xbf16>
    %123 = tpu.concatenate %121, %122 in 1 : vector<16x255xbf16>, vector<16x1xbf16> -> vector<16x256xbf16>
    %c5_54 = arith.constant 5 : index
    %c0_55 = arith.constant 0 : index
    %124 = vector.load %arg2[%c5_54, %c0_55] : memref<9x256xbf16, #tpu.memory_space<vmem>>, vector<1x256xbf16>
    %125 = vector.broadcast %124 : vector<1x256xbf16> to vector<16x256xbf16>
    %126 = arith.mulf %123, %125 : vector<16x256xbf16>
    %127 = vector.extract_strided_slice %96 {offsets = [0, 15], sizes = [16, 241], strides = [1, 1]} : vector<16x256xbf16> to vector<16x241xbf16>
    %128 = vector.extract_strided_slice %96 {offsets = [0, 0], sizes = [16, 15], strides = [1, 1]} : vector<16x256xbf16> to vector<16x15xbf16>
    %129 = tpu.concatenate %127, %128 in 1 : vector<16x241xbf16>, vector<16x15xbf16> -> vector<16x256xbf16>
    %c6_56 = arith.constant 6 : index
    %c0_57 = arith.constant 0 : index
    %130 = vector.load %arg2[%c6_56, %c0_57] : memref<9x256xbf16, #tpu.memory_space<vmem>>, vector<1x256xbf16>
    %131 = vector.broadcast %130 : vector<1x256xbf16> to vector<16x256xbf16>
    %132 = arith.mulf %129, %131 : vector<16x256xbf16>
    %133 = vector.extract_strided_slice %96 {offsets = [0, 16], sizes = [16, 240], strides = [1, 1]} : vector<16x256xbf16> to vector<16x240xbf16>
    %134 = vector.extract_strided_slice %96 {offsets = [0, 0], sizes = [16, 16], strides = [1, 1]} : vector<16x256xbf16> to vector<16x16xbf16>
    %135 = tpu.concatenate %133, %134 in 1 : vector<16x240xbf16>, vector<16x16xbf16> -> vector<16x256xbf16>
    %c7_58 = arith.constant 7 : index
    %c0_59 = arith.constant 0 : index
    %136 = vector.load %arg2[%c7_58, %c0_59] : memref<9x256xbf16, #tpu.memory_space<vmem>>, vector<1x256xbf16>
    %137 = vector.broadcast %136 : vector<1x256xbf16> to vector<16x256xbf16>
    %138 = arith.mulf %135, %137 : vector<16x256xbf16>
    %139 = vector.extract_strided_slice %96 {offsets = [0, 17], sizes = [16, 239], strides = [1, 1]} : vector<16x256xbf16> to vector<16x239xbf16>
    %140 = vector.extract_strided_slice %96 {offsets = [0, 0], sizes = [16, 17], strides = [1, 1]} : vector<16x256xbf16> to vector<16x17xbf16>
    %141 = tpu.concatenate %139, %140 in 1 : vector<16x239xbf16>, vector<16x17xbf16> -> vector<16x256xbf16>
    %c8_60 = arith.constant 8 : index
    %c0_61 = arith.constant 0 : index
    %142 = vector.load %arg2[%c8_60, %c0_61] : memref<9x256xbf16, #tpu.memory_space<vmem>>, vector<1x256xbf16>
    %143 = vector.broadcast %142 : vector<1x256xbf16> to vector<16x256xbf16>
    %144 = arith.mulf %141, %143 : vector<16x256xbf16>
    %145 = tpu.concatenate %102, %108, %114, %120, %96, %126, %132, %138, %144 in 0 : vector<16x256xbf16>, vector<16x256xbf16>, vector<16x256xbf16>, vector<16x256xbf16>, vector<16x256xbf16>, vector<16x256xbf16>, vector<16x256xbf16>, vector<16x256xbf16>, vector<16x256xbf16> -> vector<144x256xbf16>
    %c0_62 = arith.constant 0 : index
    %c0_63 = arith.constant 0 : index
    %146 = vector.load %arg12[%c0_62, %c0_63] : memref<4x144xbf16, #tpu.memory_space<vmem>>, vector<4x144xbf16>
    %cst_64 = arith.constant dense<0.000000e+00> : vector<4x256xf32>
    %147 = tpu.matmul %146, %145, %cst_64 {dimension_numbers = #tpu.dot_dimension_numbers<[1], [0], [0], [1], [0, 0, 1, 1], [], []>} : vector<4x144xbf16>, vector<144x256xbf16>, vector<4x256xf32> -> vector<4x256xf32>
    %c0_65 = arith.constant 0 : index
    %c8_66 = arith.constant 8 : index
    %c0_67 = arith.constant 0 : index
    %148 = vector.load %arg13[%c0_65, %c8_66, %c0_67] : memref<1x12x256xf32, #tpu.memory_space<vmem>>, vector<1x4x256xf32>
    %149 = vector.shape_cast %148 : vector<1x4x256xf32> to vector<4x256xf32>
    %150 = vector.shape_cast %147 : vector<4x256xf32> to vector<1x4x256xf32>
    tpu.vector_store %arg13[%c0_65, %c8_66, %c0_67], %150 {strides = array<i32>} : memref<1x12x256xf32, #tpu.memory_space<vmem>>, vector<1x4x256xf32>,
    return
  }
  func.func @transform_0(%arg0: i32) -> (i32, i32, i32) {
    %c0_i32 = arith.constant 0 : i32
    %c0_i32_0 = arith.constant 0 : i32
    %c0_i32_1 = arith.constant 0 : i32
    return %arg0, %c0_i32, %c0_i32_0 : i32, i32, i32
  }
  func.func @transform_1(%arg0: i32) -> (i32, i32) {
    %c0_i32 = arith.constant 0 : i32
    %c0_i32_0 = arith.constant 0 : i32
    %c0_i32_1 = arith.constant 0 : i32
    return %c0_i32, %c0_i32_0 : i32, i32
  }
  func.func @transform_2(%arg0: i32) -> (i32, i32) {
    %c0_i32 = arith.constant 0 : i32
    %c0_i32_0 = arith.constant 0 : i32
    %c0_i32_1 = arith.constant 0 : i32
    return %c0_i32, %c0_i32_0 : i32, i32
  }
  func.func @transform_3(%arg0: i32) -> (i32, i32) {
    %c0_i32 = arith.constant 0 : i32
    %c0_i32_0 = arith.constant 0 : i32
    %c0_i32_1 = arith.constant 0 : i32
    return %c0_i32, %c0_i32_0 : i32, i32
  }
  func.func @transform_4(%arg0: i32) -> (i32, i32) {
    %c0_i32 = arith.constant 0 : i32
    %c0_i32_0 = arith.constant 0 : i32
    %c0_i32_1 = arith.constant 0 : i32
    return %c0_i32, %c0_i32_0 : i32, i32
  }
  func.func @transform_5(%arg0: i32) -> (i32, i32) {
    %c0_i32 = arith.constant 0 : i32
    %c0_i32_0 = arith.constant 0 : i32
    %c0_i32_1 = arith.constant 0 : i32
    return %c0_i32, %c0_i32_0 : i32, i32
  }
  func.func @transform_6(%arg0: i32) -> (i32, i32) {
    %c0_i32 = arith.constant 0 : i32
    %c0_i32_0 = arith.constant 0 : i32
    %c0_i32_1 = arith.constant 0 : i32
    return %c0_i32, %c0_i32_0 : i32, i32
  }
  func.func @transform_7(%arg0: i32) -> (i32, i32) {
    %c0_i32 = arith.constant 0 : i32
    %c0_i32_0 = arith.constant 0 : i32
    %c0_i32_1 = arith.constant 0 : i32
    return %c0_i32, %c0_i32_0 : i32, i32
  }
  func.func @transform_8(%arg0: i32) -> (i32, i32) {
    %c0_i32 = arith.constant 0 : i32
    %c0_i32_0 = arith.constant 0 : i32
    %c0_i32_1 = arith.constant 0 : i32
    return %c0_i32, %c0_i32_0 : i32, i32
  }
  func.func @transform_9(%arg0: i32) -> (i32, i32) {
    %c0_i32 = arith.constant 0 : i32
    %c0_i32_0 = arith.constant 0 : i32
    %c0_i32_1 = arith.constant 0 : i32
    return %c0_i32, %c0_i32_0 : i32, i32
  }
  func.func @transform_10(%arg0: i32) -> (i32, i32) {
    %c0_i32 = arith.constant 0 : i32
    %c0_i32_0 = arith.constant 0 : i32
    %c0_i32_1 = arith.constant 0 : i32
    return %c0_i32, %c0_i32_0 : i32, i32
  }
  func.func @transform_11(%arg0: i32) -> (i32, i32) {
    %c0_i32 = arith.constant 0 : i32
    %c0_i32_0 = arith.constant 0 : i32
    %c0_i32_1 = arith.constant 0 : i32
    return %c0_i32, %c0_i32_0 : i32, i32
  }
  func.func @transform_12(%arg0: i32) -> (i32, i32, i32) {
    %c0_i32 = arith.constant 0 : i32
    %c0_i32_0 = arith.constant 0 : i32
    %c0_i32_1 = arith.constant 0 : i32
    return %arg0, %c0_i32, %c0_i32_0 : i32, i32, i32
  }
}

</mosaic_0001>

<bundles_post_ra>
// kernel: tpu_custom_call.1
= control target key start
LH: loop header
LB: loop body
LE: loop exit
PB: predicated region body
PF: predicated region fallthrough
CT: control target
= control target key end

     0   :  { %s1654_s21 = smov 0   ;;  %s1962_s0 = inlined_call_operand.vmem [shape: f32[2,4,256], index: 0, kind: input, shape index: {}]   ;;  %s1963_s1 = inlined_call_operand.vmem [shape: bf16[9,256], index: 1, kind: input, shape index: {}]   ;;  %s1964_s2 = inlined_call_operand.vmem [shape: f32[4,1], index: 2, kind: input, shape index: {}]   ;;  %s1965_s3 = inlined_call_operand.vmem [shape: f32[4,1], index: 3, kind: input, shape index: {}]   ;;  %s1966_s4 = inlined_call_operand.vmem [shape: bf16[16,4], index: 4, kind: input, shape index: {}]   ;;  %s1967_s5 = inlined_call_operand.vmem [shape: f32[16,1], index: 5, kind: input, shape index: {}]   ;;  %s1968_s6 = inlined_call_operand.vmem [shape: bf16[4,144], index: 6, kind: input, shape index: {}]   ;;  %s1969_s7 = inlined_call_operand.vmem [shape: f32[8,1], index: 7, kind: input, shape index: {}]   ;;  %s1970_s8 = inlined_call_operand.vmem [shape: f32[8,1], index: 8, kind: input, shape index: {}]   ;;  %s1971_s9 = inlined_call_operand.vmem [shape: bf16[16,8], index: 9, kind: input, shape index: {}]   ;;  %s1972_s10 = inlined_call_operand.vmem [shape: f32[16,1], index: 10, kind: input, shape index: {}]   ;;  %s1973_s11 = inlined_call_operand.vmem [shape: bf16[4,144], index: 11, kind: input, shape index: {}]   ;;  %s1974_s12 = inlined_call_operand.vmem [shape: f32[2,12,256], index: 12, kind: output, shape index: {}]  }
   0x1 LB: > { %s1521_s22 = sadd.s32 4294967295, %s1578_s21   ;;  %p1525_p0 = scmp.ge.s32.totalorder %s1578_s21, 1  ;;  %s1578_s21 = sphi %s1654_s21, %s22_s21  }
   0x2   : > { %p362_p1 = scmp.lt.s32.totalorder %s1578_s21, 3 }
   0x4   : > { %p363_p2 = pnand %p1525_p0, %p362_p1 }
   0x5   : > { %p404_p3 = scmp.lt.s32.totalorder (!%p363_p2), %s1521_s22, 1  ;;  %s1581_s24 = smov (!%p363_p2), 113  }
   0x6   : > { %366 = sbr.rel (%p363_p2) target bundleno = 1073 (0x431), region = 68  ;;  %s1582_s25 = smov (!%p363_p2), 112  }
   0x7   : > { %s1583_s26 = smov (!%p363_p2), 127   ;;  %s1585_s28 = smov (!%p363_p2), 15  }
   0x8   : > { %s1586_s29 = smov (!%p363_p2), 16  }
   0xb   : > { %v426_v0 = vld [vmem:[%s1964_s2] sm:$0xf]  ;;  %v1580_v1 = vmov 0   ;;  %s1976_s22 = smov (!%p404_p3, %s1521_s22), 1  ;;  %v449_v7 = vld [vmem:[%s1967_s5 + $0x8] sm:$0xff]  ;;  %vm469_vm0 = vcmask 1041408  }
   0xc   : > { %1569 = vset.pattern.permute.xlu0 %v1580_v1  ;;  %1570 = vset.pattern.permute.xlu1 %v1580_v1  ;;  %v434_v2 = vld [vmem:[%s1965_s3] sm:$0xf]  ;;  %s1548_s27 = sshll.u32 %s1976_s22, 3  ;;  %s1549_s13 = sshll.u32 %s1976_s22, 5  ;;  %vm465_vm1 = vcmask 31744   ;;  %vm740_vm2 = vcmask 916480  }
   0xd   : > { %429 = vperm.xlu0 %1569, %v426_v0   ;;  %1571 = vset.pattern.permute.xlu2 %v1580_v1  ;;  %s408_s30 = scalar_lea.vmem %s1962_s0, %s1548_s27  ;;  %s1674_s16 = scalar_lea.vmem %s1974_s12, %s1549_s13  ;;  %v448_v6 = vld [vmem:[%s1967_s5] sm:$0xff]  ;;  %vm702_vm3 = vcmask 924672   ;;  %vm662_vm4 = vcmask 1039360   ;;  %vm630_vm5 = vcmask 7168   ;;  %vm592_vm6 = vcmask 121856  }
   0xe   : > { %v415_v3 = vld [vmem:[%s408_s30] sm:$0xff]  ;;  %452 = vperm.xlu1 %1570, %v448_v6   ;;  %s1584_s27 = smov 1   ;;  %s1587_s30 = smov 17   ;;  %vm560_vm7 = vcmask 130048   ;;  %vm522_vm8 = vcmask 138240   ;;  %vm772_vm9 = vcmask 908288  }
   0xf   : > { %417 = vst [vmem:[#allocation1] ss:$2 sm:$0xff] %v415_v3  ;;  %v1550_v22 = vld [vmem:[%s1966_s4] sm:$0xff]  ;;  %s1588_s13 = smov 111   ;;  %vm1001_vm10 = vcmask 1043456   ;;  %vm997_vm11 = vcmask 64512  }
  0x10   : > { %v966_v45 = vld [vmem:[%s1970_s8] sm:$0xff] }
  0x11   : > { %v980_v46 = vld [vmem:[%s1972_s10] sm:$0xff] }
  0x12   : > { %v710_v47 = vld [vmem:[%s1963_s1] sm:$0x88]  ;;  %v670_v57 = vld [vmem:[%s1963_s1] sm:$0x44]  ;;  %v600_v60 = vld [vmem:[%s1963_s1] sm:$0x22] }
  0x13   : > { %v712_v48 = vunpack.c.l.b16 %v710_v47  ;;  %v713_v49 = vunpack.c.h.b16 %v710_v47  ;;  %v672_v61 = vunpack.c.l.b16 %v670_v57  ;;  %v673_v62 = vunpack.c.h.b16 %v670_v57 }
  0x14   : > { %v602_v63 = vunpack.c.l.b16 %v600_v60  ;;  %v603_v0 = vunpack.c.h.b16 %v600_v60 }
  0x15   : > { %437 = vperm.xlu0 %1569, %v434_v2   ;;  %v714_v50 = vpack.c.b16 %v712_v48, %v712_v48  ;;  %v715_v51 = vpack.c.b16 %v713_v49, %v713_v49  ;;  %v674_v6 = vpack.c.b16 %v672_v61, %v672_v61 }
  0x16   : > { %v418_v4 = vld.sshfl [vmem:[#allocation1] sm:$0xff pattern:$0x75316420]  ;;  %v419_v5 = vld.sshfl [vmem:[#allocation1 + $0x8] sm:$0xff pattern:$0x75316420]  ;;  %457 = vperm.xlu1 %1570, %v449_v7   ;;  %v675_v7 = vpack.c.b16 %v673_v62, %v673_v62 }
  0x17   : > { %422 = vst [vmem:[%s1674_s16] sm:$0xf] %v418_v4  ;;  %v748_v52 = vshrl.u32 %v714_v50, 16  ;;  %v752_v53 = vshrl.u32 %v715_v51, 16 }
  0x18   : > { %423 = vst [vmem:[%s1674_s16 + $0x8] sm:$0xf] %v419_v5 }
  0x19   : > { %v749_v55 = vpack.i.b16 %v748_v52, %v748_v52  ;;  %v753_v56 = vpack.i.b16 %v752_v53, %v752_v53  ;;  %v780_v52 = vld [vmem:[%s1963_s1 + $0x8] sm:$0x11] }
  0x1a   : > { %v782_v57 = vunpack.c.l.b16 %v780_v52 }
  0x1b   : > { %v751_v58 = vperm.slane %v749_v55, 3  ;;  %v755_v59 = vperm.slane %v753_v56, 3 }
  0x1d   : > { %v760_v1 = vunpack.c.l.bf16 %v751_v58  ;;  %v761_v2 = vunpack.c.l.bf16 %v755_v59 }
  0x1e   : > { %v424_v9 = vld [vmem:[%s1674_s16] sm:$0xf] }
  0x1f   : > { %v425_v10 = vld [vmem:[%s1674_s16 + $0x8] sm:$0xf] }
  0x7f   : > { %v430_v8 = vpop.permute.xlu0 %429 }
  0x80   : > { %v432_v11 = vmul.f32 %v430_v8, %v424_v9  ;;  %v433_v12 = vmul.f32 %v430_v8, %v425_v10  ;;  %v453_v24 = vpop.permute.xlu1 %452 }
  0x87   : > { %v438_v13 = vpop.permute.xlu0 %437 }
  0x88   : > { %v440_v14 = vadd.f32 %v438_v13, %v432_v11  ;;  %v441_v15 = vadd.f32 %v438_v13, %v433_v12  ;;  %v458_v29 = vpop.permute.xlu1 %457  ;;  %v604_v12 = vpack.c.b16 %v602_v63, %v602_v63  ;;  %v1742_v13 = vpack.c.b16 %v603_v0, %v603_v0 }
  0x8a   : > { %v442_v16 = vmax.f32 %v440_v14, 0.0  ;;  %v443_v17 = vmax.f32 %v441_v15, 0.0  ;;  %v607_v48 = vpack.i.b16 %v604_v12, %v604_v12  ;;  %v611_v62 = vpack.i.b16 %v1742_v13, %v1742_v13 }
  0x8c   : > { %v446_v18 = vpack.c.bf16 %v442_v16, %v442_v16  ;;  %v447_v19 = vpack.c.bf16 %v443_v17, %v443_v17  ;;  %v1751_v61 = vperm.slane %v607_v48, 1 }
  0x8e   : > { %v471_v20 = vsel %vm469_vm0, %v446_v18, 0  ;;  %v474_v21 = vsel %vm469_vm0, %v447_v19, 0  ;;  %v677_v18 = vshrl.u32 %v674_v6, 16  ;;  %v682_v19 = vshrl.u32 %v675_v7, 16 }
  0x8f   : > { %483 = vmatpush.bf16.msra.mxu2 %v471_v20  ;;  %497 = vmatpush.bf16.msra.mxu1 %v474_v21  ;;  %v530_v20 = vld [vmem:[%s1963_s1] sm:$0x11] }
  0x92   : > { %1534 = vmatmul.msk.bf16.vlgmr.msra.gmra.mxu2 %vm465_vm1, %v1550_v22  ;;  %1535 = vmatmul.msk.bf16.vlgmr.msra.gmra.mxu1 %vm465_vm1, %v1550_v22 }
 0x10f   : > { %v499_v23 = vpop.f32.mrf.mxu1 }
 0x110   : > { %v500_v26 = vadd.f32 %v499_v23, %v453_v24  ;;  %v717_v23 = vpack.i.b16 %v714_v50, %v714_v50 }
 0x112   : > { %v505_v30 = vmax.f32 %v500_v26, 0.0  ;;  %v642_v26 = vshrl.u32 %v1742_v13, 16 }
 0x115   : > { %v485_v25 = vpop.f32.mrf.mxu2 }
 0x116   : > { %v486_v27 = vadd.f32 %v485_v25, %v453_v24  ;;  %v721_v24 = vpack.i.b16 %v715_v51, %v715_v51  ;;  %v638_v25 = vshrl.u32 %v604_v12, 16 }
 0x117   : > { %v501_v28 = vpop.f32.mrf.mxu1 }
 0x118   : > { %v504_v31 = vmax.f32 %v486_v27, 0.0  ;;  %v502_v32 = vadd.f32 %v501_v28, %v458_v29  ;;  %v532_v27 = vunpack.c.l.b16 %v530_v20  ;;  %v533_v28 = vunpack.c.h.b16 %v530_v20 }
 0x11a   : > { %v508_v35 = vpack.c.bf16 %v505_v30, %v504_v31  ;;  %v507_v36 = vmax.f32 %v502_v32, 0.0 }
 0x11c   : > { %v512_v39 = vunpack.c.h.b16 %v508_v35  ;;  %v517_v40 = vunpack.c.l.b16 %v508_v35 }
 0x11d   : > { %v487_v33 = vpop.f32.mrf.mxu2 }
 0x11e   : > { %v488_v34 = vadd.f32 %v487_v33, %v458_v29  ;;  %v678_v33 = vpack.i.b16 %v677_v18, %v677_v18  ;;  %v1761_v18 = vperm.slane %v611_v62, 1 }
 0x120   : > { %v506_v37 = vmax.f32 %v488_v34, 0.0  ;;  %v683_v34 = vpack.i.b16 %v682_v19, %v682_v19  ;;  %v618_v19 = vunpack.c.l.bf16 %v1751_v61  ;;  %v981_v61 = vld [vmem:[%s1972_s10 + $0x8] sm:$0xff] }
 0x122   : > { %v509_v38 = vpack.c.bf16 %v507_v36, %v506_v37  ;;  %v719_v37 = vperm.slane %v717_v23, 3  ;;  %v685_v47 = vperm.slane %v683_v34, 2 }
 0x124   : > { %v513_v41 = vunpack.c.h.b16 %v509_v38  ;;  %v518_v42 = vunpack.c.l.b16 %v509_v38  ;;  %v723_v38 = vperm.slane %v721_v24, 3  ;;  %v728_v49 = vunpack.c.l.bf16 %v719_v37 }
 0x125   : > { %v691_v60 = vunpack.c.l.bf16 %v685_v47 }
 0x126   : > { %v1689_v43 = vpack.c.b16 %v513_v41, %v512_v39  ;;  %v1691_v44 = vpack.c.b16 %v518_v42, %v517_v40  ;;  %v639_v39 = vpack.i.b16 %v638_v25, %v638_v25  ;;  %v643_v41 = vpack.i.b16 %v642_v26, %v642_v26 }
 0x127   : > { %v534_v42 = vpack.c.b16 %v532_v27, %v532_v27  ;;  %v729_v50 = vunpack.c.l.bf16 %v723_v38 }
 0x128   : > { %698 = vrot.lane.b32.xlu0 %v1691_v44, %s1581_s24  ;;  %736 = vrot.lane.b32.xlu2 %v1691_v44, %s1582_s25  ;;  %v641_v51 = vperm.slane %v639_v39, 1 }
 0x129   : > { %700 = vrot.lane.b32.xlu1 %v1689_v43, %s1581_s24  ;;  %v568_v55 = vshrl.u32 %v534_v42, 16 }
 0x12b   : > { %v1757_v7 = vpack.i.b16 %v568_v55, %v568_v55 }
 0x12d   : > { %v571_v25 = vperm.slane %v1757_v7, 0 }
 0x130   : > { %660 = vrot.lane.b32.xlu0 %v1689_v43, %s1583_s26  ;;  %738 = vrot.lane.b32.xlu2 %v1689_v43, %s1582_s25 }
 0x131   : > { %626 = vrot.lane.b32.xlu1 %v1689_v43, %s1584_s27 }
 0x138   : > { %588 = vrot.lane.b32.xlu0 %v1689_v43, %s1585_s28  ;;  %658 = vrot.lane.b32.xlu2 %v1691_v44, %s1583_s26 }
 0x139   : > { %590 = vrot.lane.b32.xlu1 %v1691_v44, %s1585_s28 }
 0x140   : > { %558 = vrot.lane.b32.xlu0 %v1691_v44, %s1586_s29  ;;  %628 = vrot.lane.b32.xlu2 %v1691_v44, %s1584_s27 }
 0x141   : > { %515 = vrot.lane.b32.xlu1 %v1689_v43, %s1587_s30 }
 0x148   : > { %768 = vrot.lane.b32.xlu0 %v1691_v44, %s1588_s13  ;;  %556 = vrot.lane.b32.xlu2 %v1689_v43, %s1586_s29 }
 0x149   : > { %770 = vrot.lane.b32.xlu1 %v1689_v43, %s1588_s13 }
 0x150   : > { %969 = vperm.xlu0 %1569, %v966_v45   ;;  %520 = vrot.lane.b32.xlu2 %v1691_v44, %s1587_s30  ;;  %v535_v45 = vpack.c.b16 %v533_v28, %v533_v28 }
 0x151   : > { %984 = vperm.xlu1 %1570, %v980_v46   ;;  %v680_v46 = vperm.slane %v678_v33, 2 }
 0x152   : > { %v572_v56 = vshrl.u32 %v535_v45, 16 }
 0x153   : > { %v690_v59 = vunpack.c.l.bf16 %v680_v46 }
 0x182   : > { %v737_v54 = vpop.permute.xlu2 %736 }
 0x18a   : > { %v739_v3 = vpop.permute.xlu2 %738 }
 0x18b   : > { %v741_v4 = vsel %vm740_vm2, %v737_v54, %v739_v3  ;;  %v746_v5 = vsel %vm740_vm2, %v739_v3, %v737_v54  ;;  %v645_v54 = vperm.slane %v643_v41, 1 }
 0x18c   : > { %v756_v8 = vunpack.c.l.bf16 %v741_v4  ;;  %v757_v9 = vunpack.c.l.bf16 %v746_v5  ;;  %v758_v10 = vunpack.c.h.bf16 %v741_v4  ;;  %v759_v11 = vunpack.c.h.bf16 %v746_v5 }
 0x18e   : > { %v762_v14 = vmul.f32 %v760_v1, %v756_v8  ;;  %v763_v15 = vmul.f32 %v761_v2, %v757_v9  ;;  %v764_v16 = vmul.f32 %v760_v1, %v758_v10  ;;  %v765_v17 = vmul.f32 %v761_v2, %v759_v11 }
 0x18f   : > { %v537_v1 = vpack.i.b16 %v534_v42, %v534_v42  ;;  %v541_v2 = vpack.i.b16 %v535_v45, %v535_v45  ;;  %v1759_v8 = vpack.i.b16 %v572_v56, %v572_v56  ;;  %v783_v9 = vunpack.c.h.b16 %v780_v52 }
 0x190   : > { %v766_v21 = vpack.c.bf16 %v763_v15, %v762_v14  ;;  %v767_v22 = vpack.c.bf16 %v765_v17, %v764_v16  ;;  %v784_v10 = vpack.c.b16 %v782_v57, %v782_v57  ;;  %v650_v16 = vunpack.c.l.bf16 %v641_v51 }
 0x191   : > { %v651_v17 = vunpack.c.l.bf16 %v645_v54  ;;  %v1766_v23 = vperm.slane %v541_v2, 0  ;;  %v575_v26 = vperm.slane %v1759_v8, 0  ;;  %v1770_v27 = vpack.c.b16 %v783_v9, %v783_v9 }
 0x192   : > { %v870_v29 = vunpack.c.l.b16 %v766_v21  ;;  %v872_v30 = vunpack.c.l.b16 %v767_v22  ;;  %v871_v31 = vunpack.c.h.b16 %v766_v21  ;;  %v873_v32 = vunpack.c.h.b16 %v767_v22  ;;  %v659_v40 = vpop.permute.xlu2 %658 }
 0x193   : > { %v1764_v22 = vperm.slane %v537_v1, 0  ;;  %v787_v28 = vpack.i.b16 %v784_v10, %v784_v10 }
 0x194   : > { %v874_v35 = vpack.c.b16 %v872_v30, %v870_v29  ;;  %v875_v36 = vpack.c.b16 %v873_v32, %v871_v31  ;;  %v888_v29 = vld [vmem:[%s1968_s6] sm:$0xf] }
 0x195   : > { %890 = vst [vmem:[#allocation1] ss:$4 sm:$0xff] %v888_v29  ;;  %v1779_v56 = vperm.slane %v787_v28, 0 }
 0x196   : > { %896 = vmatpush.bf16.msrb.mxu2 %v874_v35  ;;  %922 = vmatpush.bf16.msra.mxu0 %v875_v36 }
 0x19a   : > { %v699_v53 = vpop.permute.xlu0 %698  ;;  %v629_v15 = vpop.permute.xlu2 %628 }
 0x19b   : > { %v701_v58 = vpop.permute.xlu1 %700 }
 0x19c   : > { %v703_v63 = vsel %vm702_vm3, %v699_v53, %v701_v58  ;;  %v708_v0 = vsel %vm702_vm3, %v701_v58, %v699_v53 }
 0x19d   : > { %v724_v3 = vunpack.c.l.bf16 %v703_v63  ;;  %v725_v4 = vunpack.c.l.bf16 %v708_v0  ;;  %v726_v5 = vunpack.c.h.bf16 %v703_v63  ;;  %v727_v6 = vunpack.c.h.bf16 %v708_v0 }
 0x19f   : > { %v730_v11 = vmul.f32 %v728_v49, %v724_v3  ;;  %v731_v12 = vmul.f32 %v729_v50, %v725_v4  ;;  %v732_v14 = vmul.f32 %v728_v49, %v726_v5  ;;  %v733_v13 = vmul.f32 %v729_v50, %v727_v6  ;;  %v1781_v4 = vld.sshfl [vmem:[#allocation1] sm:$0xff pattern:$0x73625140] }
 0x1a0   : > { %v619_v5 = vunpack.c.l.bf16 %v1761_v18 }
 0x1a1   : > { %v734_v20 = vpack.c.bf16 %v731_v12, %v730_v11  ;;  %v735_v21 = vpack.c.bf16 %v733_v13, %v732_v14  ;;  %v1784_v12 = vld.sshfl [vmem:[#allocation1 + $0x8] sm:$0xff pattern:$0x73625140]  ;;  %v1404_v14 = vld [vmem:[%s1973_s11] sm:$0xf] }
 0x1a2   : > { %v661_v24 = vpop.permute.xlu0 %660  ;;  %v557_v0 = vpop.permute.xlu2 %556  ;;  %v958_v13 = vld [vmem:[%s1969_s7] sm:$0xff]  ;;  %1406 = vst [vmem:[#allocation1] ss:$4 sm:$0xff] %v1404_v14 }
 0x1a3   : > { %v663_v30 = vsel %vm662_vm4, %v659_v40, %v661_v24  ;;  %v668_v31 = vsel %vm662_vm4, %v661_v24, %v659_v40  ;;  %v627_v32 = vpop.permute.xlu1 %626  ;;  %v860_v33 = vunpack.c.l.b16 %v734_v20  ;;  %v862_v34 = vunpack.c.l.b16 %v735_v21  ;;  %961 = vperm.xlu2 %1571, %v958_v13  }
 0x1a4   : > { %v686_v35 = vunpack.c.l.bf16 %v663_v30  ;;  %v687_v36 = vunpack.c.l.bf16 %v668_v31  ;;  %v688_v37 = vunpack.c.h.bf16 %v663_v30  ;;  %v689_v38 = vunpack.c.h.bf16 %v668_v31 }
 0x1a5   : > { %v631_v39 = vsel %vm630_vm5, %v629_v15, %v627_v32  ;;  %v636_v41 = vsel %vm630_vm5, %v627_v32, %v629_v15  ;;  %v864_v42 = vpack.c.b16 %v862_v34, %v860_v33  ;;  %v861_v45 = vunpack.c.h.b16 %v734_v20 }
 0x1a6   : > { %v692_v46 = vmul.f32 %v690_v59, %v686_v35  ;;  %v693_v47 = vmul.f32 %v691_v60, %v687_v36  ;;  %v694_v48 = vmul.f32 %v690_v59, %v688_v37  ;;  %v695_v49 = vmul.f32 %v691_v60, %v689_v38 }
 0x1a7   : > { %v646_v50 = vunpack.c.l.bf16 %v636_v41  ;;  %v647_v40 = vunpack.c.l.bf16 %v631_v39  ;;  %v648_v51 = vunpack.c.h.bf16 %v636_v41  ;;  %v649_v52 = vunpack.c.h.bf16 %v631_v39  ;;  %897 = vmatpush.bf16.msrb.mxu2 %v864_v42 }
 0x1a8   : > { %v863_v53 = vunpack.c.h.b16 %v735_v21  ;;  %v696_v54 = vpack.c.bf16 %v693_v47, %v692_v46  ;;  %v697_v55 = vpack.c.bf16 %v695_v49, %v694_v48  ;;  %v791_v31 = vpack.i.b16 %v1770_v27, %v1770_v27 }
 0x1a9   : > { %v652_v57 = vmul.f32 %v650_v16, %v646_v50  ;;  %v653_v58 = vmul.f32 %v651_v17, %v647_v40  ;;  %v654_v62 = vmul.f32 %v650_v16, %v648_v51  ;;  %v655_v63 = vmul.f32 %v651_v17, %v649_v52 }
 0x1aa   : > { %v865_v1 = vpack.c.b16 %v863_v53, %v861_v45  ;;  %v589_v2 = vpop.permute.xlu0 %588  ;;  %v850_v3 = vunpack.c.l.b16 %v696_v54  ;;  %v852_v59 = vunpack.c.l.b16 %v697_v55  ;;  %v851_v60 = vunpack.c.h.b16 %v696_v54  ;;  %v521_v50 = vpop.permute.xlu2 %520 }
 0x1ab   : > { %v591_v6 = vpop.permute.xlu1 %590  ;;  %v853_v9 = vunpack.c.h.b16 %v697_v55  ;;  %v656_v10 = vpack.c.bf16 %v653_v58, %v652_v57  ;;  %v657_v11 = vpack.c.bf16 %v655_v63, %v654_v62  ;;  %v580_v36 = vunpack.c.l.bf16 %v571_v25  ;;  %989 = vperm.xlu2 %1571, %v981_v61  }
 0x1ac   : > { %923 = vmatpush.bf16.msra.mxu0 %v865_v1  ;;  %v593_v15 = vsel %vm592_vm6, %v591_v6, %v589_v2  ;;  %v598_v16 = vsel %vm592_vm6, %v589_v2, %v591_v6  ;;  %v854_v17 = vpack.c.b16 %v852_v59, %v850_v3  ;;  %v548_v37 = vunpack.c.l.bf16 %v1764_v22 }
 0x1ad   : > { %v614_v18 = vunpack.c.l.bf16 %v598_v16  ;;  %v615_v20 = vunpack.c.l.bf16 %v593_v15  ;;  %v616_v21 = vunpack.c.h.bf16 %v598_v16  ;;  %v617_v24 = vunpack.c.h.bf16 %v593_v15 }
 0x1ae   : > { %898 = vmatpush.bf16.msrb.mxu2 %v854_v17  ;;  %v855_v28 = vpack.c.b16 %v853_v9, %v851_v60  ;;  %v838_v29 = vunpack.c.l.b16 %v656_v10  ;;  %v840_v30 = vunpack.c.l.b16 %v657_v11  ;;  %v549_v38 = vunpack.c.l.bf16 %v1766_v23 }
 0x1af   : > { %v620_v32 = vmul.f32 %v618_v19, %v614_v18  ;;  %v621_v33 = vmul.f32 %v619_v5, %v615_v20  ;;  %v622_v34 = vmul.f32 %v618_v19, %v616_v21  ;;  %v623_v35 = vmul.f32 %v619_v5, %v617_v24 }
 0x1b0   : > { %924 = vmatpush.bf16.msra.mxu0 %v855_v28  ;;  %v839_v39 = vunpack.c.h.b16 %v656_v10  ;;  %v841_v41 = vunpack.c.h.b16 %v657_v11  ;;  %v581_v19 = vunpack.c.l.bf16 %v575_v26  ;;  %v842_v7 = vpack.c.b16 %v840_v30, %v838_v29 }
 0x1b1   : > { %v624_v27 = vpack.c.bf16 %v621_v33, %v620_v32  ;;  %v625_v42 = vpack.c.bf16 %v623_v35, %v622_v34  ;;  %v1810_v25 = vperm.slane %v791_v31, 0  ;;  %v798_v22 = vunpack.c.l.bf16 %v1779_v56 }
 0x1b2   : > { %v559_v45 = vpop.permute.xlu0 %558  ;;  %899 = vmatpush.bf16.msrb.mxu2 %v1691_v44  ;;  %v843_v53 = vpack.c.b16 %v841_v41, %v839_v39 }
 0x1b3   : > { %v561_v23 = vsel %vm560_vm7, %v559_v45, %v557_v0  ;;  %v566_v46 = vsel %vm560_vm7, %v557_v0, %v559_v45  ;;  %v516_v47 = vpop.permute.xlu1 %515  ;;  %v828_v48 = vunpack.c.l.b16 %v624_v27  ;;  %v830_v49 = vunpack.c.l.b16 %v625_v42 }
 0x1b4   : > { %v576_v40 = vunpack.c.l.bf16 %v566_v46  ;;  %v577_v51 = vunpack.c.l.bf16 %v561_v23  ;;  %v578_v8 = vunpack.c.h.bf16 %v566_v46  ;;  %v579_v26 = vunpack.c.h.bf16 %v561_v23  ;;  %925 = vmatpush.bf16.msra.mxu0 %v1689_v43 }
 0x1b5   : > { %v523_v44 = vsel %vm522_vm8, %v521_v50, %v516_v47  ;;  %v528_v52 = vsel %vm522_vm8, %v516_v47, %v521_v50  ;;  %v829_v54 = vunpack.c.h.b16 %v624_v27  ;;  %v832_v2 = vpack.c.b16 %v830_v49, %v828_v48 }
 0x1b6   : > { %v582_v55 = vmul.f32 %v580_v36, %v576_v40  ;;  %v583_v56 = vmul.f32 %v581_v19, %v577_v51  ;;  %v584_v57 = vmul.f32 %v580_v36, %v578_v8  ;;  %v585_v58 = vmul.f32 %v581_v19, %v579_v26  ;;  %900 = vmatpush.bf16.msrb.mxu2 %v842_v7 }
 0x1b7   : > { %v544_v62 = vunpack.c.l.bf16 %v528_v52  ;;  %v545_v63 = vunpack.c.l.bf16 %v523_v44  ;;  %v546_v0 = vunpack.c.h.bf16 %v528_v52  ;;  %v547_v1 = vunpack.c.h.bf16 %v523_v44 }
 0x1b8   : > { %926 = vmatpush.bf16.msra.mxu0 %v843_v53  ;;  %v831_v3 = vunpack.c.h.b16 %v625_v42  ;;  %v586_v43 = vpack.c.bf16 %v583_v56, %v582_v55  ;;  %v587_v59 = vpack.c.bf16 %v585_v58, %v584_v57  ;;  %v799_v16 = vunpack.c.l.bf16 %v1810_v25 }
 0x1b9   : > { %v550_v60 = vmul.f32 %v548_v37, %v544_v62  ;;  %v551_v5 = vmul.f32 %v549_v38, %v545_v63  ;;  %v552_v6 = vmul.f32 %v548_v37, %v546_v0  ;;  %v553_v9 = vmul.f32 %v549_v38, %v547_v1 }
 0x1ba   : > { %v769_v10 = vpop.permute.xlu0 %768  ;;  %901 = vmatpush.bf16.msrb.mxu2 %v832_v2  ;;  %v833_v11 = vpack.c.b16 %v831_v3, %v829_v54  ;;  %v818_v14 = vunpack.c.l.b16 %v586_v43  ;;  %v820_v13 = vunpack.c.l.b16 %v587_v59  ;;  %v819_v15 = vunpack.c.h.b16 %v586_v43  ;;  %v1551_v43 = vld [vmem:[%s1971_s9] sm:$0xff] }
 0x1bb   : > { %v771_v17 = vpop.permute.xlu1 %770  ;;  %v821_v18 = vunpack.c.h.b16 %v587_v59  ;;  %v554_v20 = vpack.c.bf16 %v551_v5, %v550_v60  ;;  %v555_v21 = vpack.c.bf16 %v553_v9, %v552_v6 }
 0x1bc   : > { %v773_v24 = vsel %vm772_vm9, %v769_v10, %v771_v17  ;;  %v778_v28 = vsel %vm772_vm9, %v771_v17, %v769_v10  ;;  %927 = vmatpush.bf16.msra.mxu0 %v833_v11  ;;  %v822_v29 = vpack.c.b16 %v820_v13, %v818_v14 }
 0x1bd   : > { %v794_v30 = vunpack.c.l.bf16 %v773_v24  ;;  %v795_v31 = vunpack.c.l.bf16 %v778_v28  ;;  %v796_v32 = vunpack.c.h.bf16 %v773_v24  ;;  %v797_v33 = vunpack.c.h.bf16 %v778_v28 }
 0x1be   : > { %902 = vmatpush.bf16.msrb.mxu2 %v822_v29  ;;  %v823_v34 = vpack.c.b16 %v821_v18, %v819_v15  ;;  %v808_v35 = vunpack.c.l.b16 %v554_v20  ;;  %v810_v36 = vunpack.c.l.b16 %v555_v21  ;;  %v809_v37 = vunpack.c.h.b16 %v554_v20 }
 0x1bf   : > { %v800_v38 = vmul.f32 %v798_v22, %v794_v30  ;;  %v801_v39 = vmul.f32 %v799_v16, %v795_v31  ;;  %v802_v41 = vmul.f32 %v798_v22, %v796_v32  ;;  %v803_v27 = vmul.f32 %v799_v16, %v797_v33 }
 0x1c0   : > { %928 = vmatpush.bf16.msra.mxu0 %v823_v34  ;;  %v812_v42 = vpack.c.b16 %v810_v36, %v808_v35  ;;  %v811_v61 = vunpack.c.h.b16 %v555_v21 }
 0x1c1   : > { %v804_v19 = vpack.c.bf16 %v801_v39, %v800_v38  ;;  %v805_v45 = vpack.c.bf16 %v803_v27, %v802_v41  ;;  %v1230_v38 = vld [vmem:[%s1963_s1] sm:$0x88]  ;;  %v1192_v27 = vld [vmem:[%s1963_s1] sm:$0x44] }
 0x1c2   : > { %903 = vmatpush.bf16.msrb.mxu2 %v812_v42  ;;  %v813_v7 = vpack.c.b16 %v811_v61, %v809_v37  ;;  %v970_v58 = vpop.permute.xlu0 %969  ;;  %v1232_v39 = vunpack.c.l.b16 %v1230_v38  ;;  %v1233_v41 = vunpack.c.h.b16 %v1230_v38  ;;  %v1126_v42 = vld [vmem:[%s1963_s1] sm:$0x22] }
 0x1c3   : > { %v880_v25 = vunpack.c.l.b16 %v804_v19  ;;  %v882_v23 = vunpack.c.l.b16 %v805_v45  ;;  %v881_v46 = vunpack.c.h.b16 %v804_v19  ;;  %v883_v47 = vunpack.c.h.b16 %v805_v45  ;;  %v985_v11 = vpop.permute.xlu1 %984 }
 0x1c4   : > { %929 = vmatpush.bf16.msra.mxu0 %v813_v7  ;;  %v1234_v61 = vpack.c.b16 %v1232_v39, %v1232_v39  ;;  %v1235_v19 = vpack.c.b16 %v1233_v41, %v1233_v41  ;;  %v1194_v45 = vunpack.c.l.b16 %v1192_v27  ;;  %v1195_v7 = vunpack.c.h.b16 %v1192_v27 }
 0x1c5   : > { %904 = vmatmul.bf16.vlgmr.msrb.gmra.mxu2 %v1781_v4  ;;  %v884_v48 = vpack.c.b16 %v882_v23, %v880_v25  ;;  %v885_v49 = vpack.c.b16 %v883_v47, %v881_v46  ;;  %v1128_v25 = vunpack.c.l.b16 %v1126_v42  ;;  %v1129_v23 = vunpack.c.h.b16 %v1126_v42 }
 0x1c6   : > { %v1266_v46 = vshrl.u32 %v1234_v61, 16  ;;  %v1270_v47 = vshrl.u32 %v1235_v19, 16 }
 0x1c7   : > { %916 = vmatpush.bf16.msra.mxu3 %v884_v48  ;;  %942 = vmatpush.bf16.msrb.mxu1 %v885_v49  ;;  %v1196_v48 = vpack.c.b16 %v1194_v45, %v1194_v45  ;;  %v1197_v49 = vpack.c.b16 %v1195_v7, %v1195_v7 }
 0x1c8   : > { %930 = vmatmul.bf16.vlgmr.msra.gmra.mxu0 %v1781_v4 }
 0x1ca   : > { %1536 = vmatmul.msk.bf16.vlgmr.msra.gmra.mxu3 %vm560_vm7, %v1784_v12  ;;  %1537 = vmatmul.msk.bf16.vlgmr.msrb.gmra.mxu1 %vm560_vm7, %v1784_v12 }
 0x1fd   : > { %v962_v56 = vpop.permute.xlu2 %961 }
 0x205   : > { %v990_v16 = vpop.permute.xlu2 %989 }
 0x245   : > { %v931_v22 = vpop.f32.mrf.mxu0 }
 0x247   : > { %v944_v50 = vpop.f32.mrf.mxu1 }
 0x248   : > { %v945_v40 = vadd.f32 %v944_v50, %v931_v22  ;;  %v905_v51 = vpop.f32.mrf.mxu2  ;;  %v1130_v22 = vpack.c.b16 %v1128_v25, %v1128_v25  ;;  %v1131_v50 = vpack.c.b16 %v1129_v23, %v1129_v23 }
 0x24a   : > { %v951_v8 = vrot.slane %v945_v40, 4  ;;  %v1060_v40 = vld [vmem:[%s1963_s1] sm:$0x11] }
 0x24c   : > { %955 = vst [vmem:[%s1674_s16 + $0x8] sm:$0xf0] %v951_v8  ;;  %v1271_v8 = vpack.i.b16 %v1270_v47, %v1270_v47 }
 0x24d   : > { %v918_v26 = vpop.f32.mrf.mxu3  ;;  %v933_v44 = vpop.f32.mrf.mxu0 }
 0x24e   : > { %v919_v52 = vadd.f32 %v918_v26, %v905_v51  ;;  %v1267_v51 = vpack.i.b16 %v1266_v46, %v1266_v46  ;;  %v1237_v26 = vpack.i.b16 %v1234_v61, %v1234_v61  ;;  %v1241_v44 = vpack.i.b16 %v1235_v19, %v1235_v19 }
 0x24f   : > { %v946_v53 = vpop.f32.mrf.mxu1 }
 0x250   : > { %v950_v54 = vrot.slane %v919_v52, 4  ;;  %v907_v4 = vpop.f32.mrf.mxu2  ;;  %v1062_v52 = vunpack.c.l.b16 %v1060_v40  ;;  %v1063_v53 = vunpack.c.h.b16 %v1060_v40 }
 0x251   : > { %v1204_v4 = vshrl.u32 %v1197_v49, 16 }
 0x252   : > { %954 = vst [vmem:[%s1674_s16] sm:$0xf0] %v950_v54  ;;  %v1199_v54 = vshrl.u32 %v1196_v48, 16 }
 0x253   : > { %v957_v55 = vld [vmem:[%s1674_s16 + $0x8] sm:$0xff] }
 0x254   : > { %v965_v57 = vmul.f32 %v962_v56, %v957_v55  ;;  %v1162_v55 = vshrl.u32 %v1130_v22, 16 }
 0x255   : > { %v920_v62 = vpop.f32.mrf.mxu3 }
 0x256   : > { %v973_v12 = vadd.f32 %v970_v58, %v965_v57  ;;  %v1269_v57 = vperm.slane %v1267_v51, 3 }
 0x258   : > { %v975_v63 = vmax.f32 %v973_v12, 0.0  ;;  %v1882_v12 = vperm.slane %v1237_v26, 3 }
 0x259   : > { %v956_v0 = vld [vmem:[%s1674_s16] sm:$0xff] }
 0x25a   : > { %v964_v1 = vmul.f32 %v962_v56, %v956_v0  ;;  %v979_v2 = vpack.c.bf16 %v975_v63, %v975_v63  ;;  %v1166_v56 = vshrl.u32 %v1131_v50, 16  ;;  %v1884_v63 = vperm.slane %v1241_v44, 3 }
 0x25b   : > { %v1064_v0 = vpack.c.b16 %v1062_v52, %v1062_v52 }
 0x25c   : > { %v1006_v3 = vsel %vm1001_vm10, %v979_v2, 0  ;;  %v972_v59 = vadd.f32 %v970_v58, %v964_v1  ;;  %v1273_v58 = vperm.slane %v1271_v8, 3  ;;  %v1065_v1 = vpack.c.b16 %v1063_v53, %v1063_v53 }
 0x25d   : > { %1029 = vmatpush.bf16.msra.mxu1 %v1006_v3  ;;  %v1200_v2 = vpack.i.b16 %v1199_v54, %v1199_v54  ;;  %v1205_v3 = vpack.i.b16 %v1204_v4, %v1204_v4  ;;  %v1067_v38 = vpack.i.b16 %v1064_v0, %v1064_v0 }
 0x25e   : > { %v974_v60 = vmax.f32 %v972_v59, 0.0  ;;  %v1167_v59 = vpack.i.b16 %v1166_v56, %v1166_v56  ;;  %v1071_v39 = vpack.i.b16 %v1065_v1, %v1065_v1 }
 0x25f   : > { %v1905_v51 = vperm.slane %v1067_v38, 0 }
 0x260   : > { %1543 = vmatmul.msk.bf16.vlgmr.msra.gmra.mxu1 %vm997_vm11, %v1551_v43  ;;  %v978_v5 = vpack.c.bf16 %v974_v60, %v974_v60  ;;  %v1133_v60 = vpack.i.b16 %v1130_v22, %v1130_v22  ;;  %v1907_v8 = vperm.slane %v1071_v39, 0 }
 0x262   : > { %v1003_v6 = vsel %vm1001_vm10, %v978_v5, 0  ;;  %v1278_v5 = vunpack.c.l.bf16 %v1269_v57 }
 0x263   : > { %1015 = vmatpush.bf16.msrb.mxu3 %v1003_v6  ;;  %v1279_v6 = vunpack.c.l.bf16 %v1273_v58 }
 0x266   : > { %1542 = vmatmul.msk.bf16.vlgmr.msrb.gmra.mxu3 %vm997_vm11, %v1551_v43  ;;  %v1163_v43 = vpack.i.b16 %v1162_v55, %v1162_v55 }
 0x2dd   : > { %v1031_v9 = vpop.f32.mrf.mxu1 }
 0x2de   : > { %v1032_v15 = vadd.f32 %v1031_v9, %v985_v11 }
 0x2e0   : > { %v1037_v21 = vmax.f32 %v1032_v15, 0.0 }
 0x2e5   : > { %v1033_v13 = vpop.f32.mrf.mxu1 }
 0x2e6   : > { %v1034_v17 = vadd.f32 %v1033_v13, %v990_v16  ;;  %v1100_v13 = vshrl.u32 %v1065_v1, 16  ;;  %v1296_v1 = vld [vmem:[%s1963_s1 + $0x8] sm:$0x11] }
 0x2e7   : > { %v1299_v39 = vunpack.c.h.b16 %v1296_v1 }
 0x2e8   : > { %v1039_v28 = vmax.f32 %v1034_v17, 0.0  ;;  %v1207_v17 = vperm.slane %v1205_v3, 2 }
 0x2e9   : > { %v1017_v10 = vpop.f32.mrf.mxu3 }
 0x2ea   : > { %v1018_v14 = vadd.f32 %v1017_v10, %v985_v11  ;;  %v1248_v10 = vunpack.c.l.bf16 %v1882_v12  ;;  %v1249_v11 = vunpack.c.l.bf16 %v1884_v63  ;;  %v1213_v7 = vunpack.c.l.bf16 %v1207_v17 }
 0x2ec   : > { %v1036_v18 = vmax.f32 %v1018_v14, 0.0  ;;  %v1096_v14 = vshrl.u32 %v1064_v0, 16 }
 0x2ee   : > { %v1040_v29 = vpack.c.bf16 %v1037_v21, %v1036_v18  ;;  %v1165_v18 = vperm.slane %v1163_v43, 1 }
 0x2f0   : > { %v1044_v32 = vunpack.c.h.b16 %v1040_v29  ;;  %v1049_v33 = vunpack.c.l.b16 %v1040_v29  ;;  %v1137_v29 = vpack.i.b16 %v1131_v50, %v1131_v50  ;;  %v1896_v25 = vunpack.c.l.bf16 %v1165_v18 }
 0x2f1   : > { %v1019_v20 = vpop.f32.mrf.mxu3 }
 0x2f2   : > { %v1020_v24 = vadd.f32 %v1019_v20, %v990_v16  ;;  %v1202_v16 = vperm.slane %v1200_v2, 2  ;;  %v1169_v20 = vperm.slane %v1167_v59, 1  ;;  %v1900_v48 = vperm.slane %v1137_v29, 1 }
 0x2f4   : > { %v1038_v30 = vmax.f32 %v1020_v24, 0.0  ;;  %v1212_v45 = vunpack.c.l.bf16 %v1202_v16  ;;  %v1898_v23 = vunpack.c.l.bf16 %v1169_v20 }
 0x2f6   : > { %v1041_v31 = vpack.c.bf16 %v1039_v28, %v1038_v30  ;;  %v1890_v28 = vperm.slane %v1133_v60, 1 }
 0x2f8   : > { %v1045_v34 = vunpack.c.h.b16 %v1041_v31  ;;  %v1050_v35 = vunpack.c.l.b16 %v1041_v31  ;;  %v1144_v49 = vunpack.c.l.bf16 %v1890_v28 }
 0x2fa   : > { %v1834_v36 = vpack.c.b16 %v1045_v34, %v1044_v32  ;;  %v1836_v37 = vpack.c.b16 %v1050_v35, %v1049_v33  ;;  %v1892_v34 = vpack.i.b16 %v1096_v14, %v1096_v14  ;;  %v1894_v35 = vpack.i.b16 %v1100_v13, %v1100_v13 }
 0x2fc   : > { %1220 = vrot.lane.b32.xlu2 %v1836_v37, %s1581_s24  ;;  %1256 = vrot.lane.b32.xlu0 %v1836_v37, %s1582_s25  ;;  %v1099_v50 = vperm.slane %v1892_v34, 0  ;;  %v1103_v40 = vperm.slane %v1894_v35, 0 }
 0x2fd   : > { %1258 = vrot.lane.b32.xlu1 %v1834_v36, %s1582_s25 }
 0x304   : > { %1184 = vrot.lane.b32.xlu2 %v1834_v36, %s1583_s26  ;;  %1222 = vrot.lane.b32.xlu0 %v1834_v36, %s1581_s24 }
 0x305   : > { %1182 = vrot.lane.b32.xlu1 %v1836_v37, %s1583_s26 }
 0x30c   : > { %1116 = vrot.lane.b32.xlu2 %v1834_v36, %s1585_s28  ;;  %1152 = vrot.lane.b32.xlu0 %v1834_v36, %s1584_s27 }
 0x30d   : > { %1154 = vrot.lane.b32.xlu1 %v1836_v37, %s1584_s27 }
 0x314   : > { %1088 = vrot.lane.b32.xlu2 %v1836_v37, %s1586_s29  ;;  %1118 = vrot.lane.b32.xlu0 %v1836_v37, %s1585_s28 }
 0x315   : > { %1086 = vrot.lane.b32.xlu1 %v1834_v36, %s1586_s29 }
 0x31c   : > { %1286 = vrot.lane.b32.xlu2 %v1836_v37, %s1588_s13  ;;  %1047 = vrot.lane.b32.xlu0 %v1834_v36, %s1587_s30 }
 0x31d   : > { %1052 = vrot.lane.b32.xlu1 %v1836_v37, %s1587_s30 }
 0x324   : > { %1288 = vrot.lane.b32.xlu0 %v1834_v36, %s1588_s13 }
 0x356   : > { %v1221_v62 = vpop.permute.xlu2 %1220 }
 0x35e   : > { %v1185_v19 = vpop.permute.xlu2 %1184 }
 0x36e   : > { %v1257_v9 = vpop.permute.xlu0 %1256 }
 0x36f   : > { %v1259_v15 = vpop.permute.xlu1 %1258 }
 0x370   : > { %v1260_v21 = vsel %vm740_vm2, %v1257_v9, %v1259_v15  ;;  %v1264_v24 = vsel %vm740_vm2, %v1259_v15, %v1257_v9  ;;  %v1298_v15 = vunpack.c.l.b16 %v1296_v1  ;;  %v1301_v1 = vpack.c.b16 %v1299_v39, %v1299_v39 }
 0x371   : > { %v1274_v30 = vunpack.c.l.bf16 %v1260_v21  ;;  %v1275_v31 = vunpack.c.l.bf16 %v1264_v24  ;;  %v1276_v32 = vunpack.c.h.bf16 %v1260_v21  ;;  %v1277_v33 = vunpack.c.h.bf16 %v1264_v24  ;;  %v1117_v21 = vpop.permute.xlu2 %1116 }
 0x373   : > { %v1280_v41 = vmul.f32 %v1278_v5, %v1274_v30  ;;  %v1281_v27 = vmul.f32 %v1279_v6, %v1275_v31  ;;  %v1282_v42 = vmul.f32 %v1278_v5, %v1276_v32  ;;  %v1283_v61 = vmul.f32 %v1279_v6, %v1277_v33 }
 0x375   : > { %v1284_v46 = vpack.c.bf16 %v1281_v27, %v1280_v41  ;;  %v1285_v47 = vpack.c.bf16 %v1283_v61, %v1282_v42  ;;  %v1918_v61 = vpack.c.b16 %v1298_v15, %v1298_v15  ;;  %v1307_v15 = vpack.i.b16 %v1301_v1, %v1301_v1 }
 0x376   : > { %v1223_v22 = vpop.permute.xlu0 %1222 }
 0x377   : > { %v1386_v26 = vunpack.c.l.b16 %v1284_v46  ;;  %v1388_v44 = vunpack.c.l.b16 %v1285_v47  ;;  %v1224_v52 = vsel %vm702_vm3, %v1221_v62, %v1223_v22  ;;  %v1228_v53 = vsel %vm702_vm3, %v1223_v22, %v1221_v62  ;;  %v1183_v54 = vpop.permute.xlu1 %1182 }
 0x378   : > { %v1244_v4 = vunpack.c.l.bf16 %v1224_v52  ;;  %v1245_v55 = vunpack.c.l.bf16 %v1228_v53  ;;  %v1246_v56 = vunpack.c.h.bf16 %v1224_v52  ;;  %v1247_v57 = vunpack.c.h.bf16 %v1228_v53 }
 0x379   : > { %v1186_v58 = vsel %vm662_vm4, %v1183_v54, %v1185_v19  ;;  %v1190_v12 = vsel %vm662_vm4, %v1185_v19, %v1183_v54  ;;  %v1390_v63 = vpack.c.b16 %v1388_v44, %v1386_v26  ;;  %v1387_v0 = vunpack.c.h.b16 %v1284_v46  ;;  %v1089_v35 = vpop.permute.xlu2 %1088 }
 0x37a   : > { %v1250_v2 = vmul.f32 %v1248_v10, %v1244_v4  ;;  %v1251_v3 = vmul.f32 %v1249_v11, %v1245_v55  ;;  %v1252_v43 = vmul.f32 %v1248_v10, %v1246_v56  ;;  %v1253_v59 = vmul.f32 %v1249_v11, %v1247_v57 }
 0x37b   : > { %v1208_v62 = vunpack.c.l.bf16 %v1186_v58  ;;  %v1209_v60 = vunpack.c.l.bf16 %v1190_v12  ;;  %v1210_v5 = vunpack.c.h.bf16 %v1186_v58  ;;  %v1211_v6 = vunpack.c.h.bf16 %v1190_v12  ;;  %1412 = vmatpush.bf16.msra.mxu3 %v1390_v63 }
 0x37c   : > { %v1254_v9 = vpack.c.bf16 %v1251_v3, %v1250_v2  ;;  %v1255_v14 = vpack.c.bf16 %v1253_v59, %v1252_v43  ;;  %v1389_v13 = vunpack.c.h.b16 %v1285_v47  ;;  %v1145_v55 = vunpack.c.l.bf16 %v1900_v48 }
 0x37d   : > { %v1214_v16 = vmul.f32 %v1212_v45, %v1208_v62  ;;  %v1215_v17 = vmul.f32 %v1213_v7, %v1209_v60  ;;  %v1216_v18 = vmul.f32 %v1212_v45, %v1210_v5  ;;  %v1217_v20 = vmul.f32 %v1213_v7, %v1211_v6 }
 0x37e   : > { %v1391_v24 = vpack.c.b16 %v1389_v13, %v1387_v0  ;;  %v1153_v29 = vpop.permute.xlu0 %1152  ;;  %v1376_v30 = vunpack.c.l.b16 %v1254_v9  ;;  %v1378_v31 = vunpack.c.l.b16 %v1255_v14  ;;  %v1377_v10 = vunpack.c.h.b16 %v1254_v9 }
 0x37f   : > { %v1218_v11 = vpack.c.bf16 %v1215_v17, %v1214_v16  ;;  %v1219_v32 = vpack.c.bf16 %v1217_v20, %v1216_v18  ;;  %v1155_v33 = vpop.permute.xlu1 %1154  ;;  %v1379_v38 = vunpack.c.h.b16 %v1255_v14  ;;  %v1108_v58 = vunpack.c.l.bf16 %v1099_v50 }
 0x380   : > { %1438 = vmatpush.bf16.msrb.mxu0 %v1391_v24  ;;  %v1156_v41 = vsel %vm630_vm5, %v1155_v33, %v1153_v29  ;;  %v1160_v27 = vsel %vm630_vm5, %v1153_v29, %v1155_v33  ;;  %v1380_v42 = vpack.c.b16 %v1378_v31, %v1376_v30  ;;  %v1109_v0 = vunpack.c.l.bf16 %v1103_v40 }
 0x381   : > { %v1170_v19 = vunpack.c.l.bf16 %v1160_v27  ;;  %v1171_v45 = vunpack.c.l.bf16 %v1156_v41  ;;  %v1172_v7 = vunpack.c.h.bf16 %v1160_v27  ;;  %v1173_v46 = vunpack.c.h.bf16 %v1156_v41 }
 0x382   : > { %1413 = vmatpush.bf16.msra.mxu3 %v1380_v42  ;;  %v1381_v47 = vpack.c.b16 %v1379_v38, %v1377_v10  ;;  %v1366_v22 = vunpack.c.l.b16 %v1218_v11  ;;  %v1368_v26 = vunpack.c.l.b16 %v1219_v32  ;;  %v1367_v44 = vunpack.c.h.b16 %v1218_v11 }
 0x383   : > { %v1176_v52 = vmul.f32 %v1896_v25, %v1170_v19  ;;  %v1177_v53 = vmul.f32 %v1898_v23, %v1171_v45  ;;  %v1178_v54 = vmul.f32 %v1896_v25, %v1172_v7  ;;  %v1179_v4 = vmul.f32 %v1898_v23, %v1173_v46 }
 0x384   : > { %1439 = vmatpush.bf16.msrb.mxu0 %v1381_v47  ;;  %v1370_v56 = vpack.c.b16 %v1368_v26, %v1366_v22  ;;  %v1369_v57 = vunpack.c.h.b16 %v1219_v32  ;;  %v1078_v25 = vunpack.c.l.bf16 %v1905_v51  ;;  %v1079_v23 = vunpack.c.l.bf16 %v1907_v8 }
 0x385   : > { %v1180_v12 = vpack.c.bf16 %v1177_v53, %v1176_v52  ;;  %v1181_v63 = vpack.c.bf16 %v1179_v4, %v1178_v54  ;;  %v1303_v48 = vpack.i.b16 %v1918_v61, %v1918_v61  ;;  %v1309_v26 = vperm.slane %v1307_v15, 0 }
 0x386   : > { %v1119_v2 = vpop.permute.xlu0 %1118  ;;  %1414 = vmatpush.bf16.msra.mxu3 %v1370_v56  ;;  %v1371_v3 = vpack.c.b16 %v1369_v57, %v1367_v44 }
 0x387   : > { %v1120_v43 = vsel %vm592_vm6, %v1119_v2, %v1117_v21  ;;  %v1124_v34 = vsel %vm592_vm6, %v1117_v21, %v1119_v2  ;;  %v1087_v50 = vpop.permute.xlu1 %1086  ;;  %v1354_v59 = vunpack.c.l.b16 %v1180_v12  ;;  %v1356_v62 = vunpack.c.l.b16 %v1181_v63 }
 0x388   : > { %v1140_v40 = vunpack.c.l.bf16 %v1124_v34  ;;  %v1141_v60 = vunpack.c.l.bf16 %v1120_v43  ;;  %v1142_v5 = vunpack.c.h.bf16 %v1124_v34  ;;  %v1143_v6 = vunpack.c.h.bf16 %v1120_v43  ;;  %1440 = vmatpush.bf16.msrb.mxu0 %v1371_v3  ;;  %v1287_v43 = vpop.permute.xlu2 %1286 }
 0x389   : > { %v1090_v9 = vsel %vm560_vm7, %v1089_v35, %v1087_v50  ;;  %v1094_v14 = vsel %vm560_vm7, %v1087_v50, %v1089_v35  ;;  %v1355_v13 = vunpack.c.h.b16 %v1180_v12  ;;  %v1358_v11 = vpack.c.b16 %v1356_v62, %v1354_v59 }
 0x38a   : > { %v1146_v16 = vmul.f32 %v1144_v49, %v1140_v40  ;;  %v1147_v17 = vmul.f32 %v1145_v55, %v1141_v60  ;;  %v1148_v18 = vmul.f32 %v1144_v49, %v1142_v5  ;;  %v1149_v20 = vmul.f32 %v1145_v55, %v1143_v6  ;;  %1415 = vmatpush.bf16.msra.mxu3 %v1836_v37 }
 0x38b   : > { %v1104_v21 = vunpack.c.l.bf16 %v1094_v14  ;;  %v1105_v24 = vunpack.c.l.bf16 %v1090_v9  ;;  %v1106_v29 = vunpack.c.h.bf16 %v1094_v14  ;;  %v1107_v30 = vunpack.c.h.bf16 %v1090_v9 }
 0x38c   : > { %v1150_v31 = vpack.c.bf16 %v1147_v17, %v1146_v16  ;;  %v1151_v10 = vpack.c.bf16 %v1149_v20, %v1148_v18  ;;  %1441 = vmatpush.bf16.msrb.mxu0 %v1834_v36  ;;  %v1357_v32 = vunpack.c.h.b16 %v1181_v63  ;;  %v1305_v46 = vperm.slane %v1303_v48, 0  ;;  %v1407_v20 = vld.sshfl [vmem:[#allocation1] sm:$0xff pattern:$0x73625140] }
 0x38d   : > { %v1110_v33 = vmul.f32 %v1108_v58, %v1104_v21  ;;  %v1111_v38 = vmul.f32 %v1109_v0, %v1105_v24  ;;  %v1112_v39 = vmul.f32 %v1108_v58, %v1106_v29  ;;  %v1113_v41 = vmul.f32 %v1109_v0, %v1107_v30 }
 0x38e   : > { %v1048_v27 = vpop.permute.xlu0 %1047  ;;  %1416 = vmatpush.bf16.msra.mxu3 %v1358_v11  ;;  %v1359_v28 = vpack.c.b16 %v1357_v32, %v1355_v13  ;;  %v1344_v49 = vunpack.c.l.b16 %v1150_v31  ;;  %v1346_v42 = vunpack.c.l.b16 %v1151_v10  ;;  %v1345_v37 = vunpack.c.h.b16 %v1150_v31 }
 0x38f   : > { %v1114_v61 = vpack.c.bf16 %v1111_v38, %v1110_v33  ;;  %v1115_v19 = vpack.c.bf16 %v1113_v41, %v1112_v39  ;;  %v1053_v45 = vpop.permute.xlu1 %1052  ;;  %v1347_v7 = vunpack.c.h.b16 %v1151_v10  ;;  %v1314_v34 = vunpack.c.l.bf16 %v1305_v46  ;;  %v1408_v33 = vld.sshfl [vmem:[#allocation1 + $0x8] sm:$0xff pattern:$0x73625140] }
 0x390   : > { %1442 = vmatpush.bf16.msrb.mxu0 %v1359_v28  ;;  %v1054_v36 = vsel %vm522_vm8, %v1053_v45, %v1048_v27  ;;  %v1058_v47 = vsel %vm522_vm8, %v1048_v27, %v1053_v45  ;;  %v1348_v22 = vpack.c.b16 %v1346_v42, %v1344_v49  ;;  %v1315_v50 = vunpack.c.l.bf16 %v1309_v26 }
 0x391   : > { %v1074_v44 = vunpack.c.l.bf16 %v1058_v47  ;;  %v1075_v52 = vunpack.c.l.bf16 %v1054_v36  ;;  %v1076_v53 = vunpack.c.h.bf16 %v1058_v47  ;;  %v1077_v54 = vunpack.c.h.bf16 %v1054_v36 }
 0x392   : > { %1417 = vmatpush.bf16.msra.mxu3 %v1348_v22  ;;  %v1349_v4 = vpack.c.b16 %v1347_v7, %v1345_v37  ;;  %v1334_v55 = vunpack.c.l.b16 %v1114_v61  ;;  %v1336_v56 = vunpack.c.l.b16 %v1115_v19  ;;  %v1335_v57 = vunpack.c.h.b16 %v1114_v61 }
 0x393   : > { %v1080_v58 = vmul.f32 %v1078_v25, %v1074_v44  ;;  %v1081_v12 = vmul.f32 %v1079_v23, %v1075_v52  ;;  %v1082_v63 = vmul.f32 %v1078_v25, %v1076_v53  ;;  %v1083_v0 = vmul.f32 %v1079_v23, %v1077_v54 }
 0x394   : > { %1443 = vmatpush.bf16.msrb.mxu0 %v1349_v4  ;;  %v1338_v1 = vpack.c.b16 %v1336_v56, %v1334_v55  ;;  %v1337_v2 = vunpack.c.h.b16 %v1115_v19 }
 0x395   : > { %v1084_v3 = vpack.c.bf16 %v1081_v12, %v1080_v58  ;;  %v1085_v48 = vpack.c.bf16 %v1083_v0, %v1082_v63 }
 0x396   : > { %v1289_v59 = vpop.permute.xlu0 %1288  ;;  %1418 = vmatpush.bf16.msra.mxu3 %v1338_v1  ;;  %v1339_v62 = vpack.c.b16 %v1337_v2, %v1335_v57 }
 0x397   : > { %v1290_v35 = vsel %vm772_vm9, %v1287_v43, %v1289_v59  ;;  %v1294_v40 = vsel %vm772_vm9, %v1289_v59, %v1287_v43  ;;  %v1324_v51 = vunpack.c.l.b16 %v1084_v3  ;;  %v1326_v25 = vunpack.c.l.b16 %v1085_v48 }
 0x398   : > { %v1310_v60 = vunpack.c.l.bf16 %v1290_v35  ;;  %v1311_v8 = vunpack.c.l.bf16 %v1294_v40  ;;  %v1312_v23 = vunpack.c.h.bf16 %v1290_v35  ;;  %v1313_v5 = vunpack.c.h.bf16 %v1294_v40  ;;  %1444 = vmatpush.bf16.msrb.mxu0 %v1339_v62 }
 0x399   : > { %v1328_v6 = vpack.c.b16 %v1326_v25, %v1324_v51  ;;  %v1325_v9 = vunpack.c.h.b16 %v1084_v3  ;;  %v1327_v14 = vunpack.c.h.b16 %v1085_v48 }
 0x39a   : > { %v1316_v13 = vmul.f32 %v1314_v34, %v1310_v60  ;;  %v1317_v15 = vmul.f32 %v1315_v50, %v1311_v8  ;;  %v1318_v16 = vmul.f32 %v1314_v34, %v1312_v23  ;;  %v1319_v17 = vmul.f32 %v1315_v50, %v1313_v5 }
 0x39b   : > { %1419 = vmatpush.bf16.msra.mxu3 %v1328_v6  ;;  %v1329_v18 = vpack.c.b16 %v1327_v14, %v1325_v9 }
 0x39c   : > { %v1320_v21 = vpack.c.bf16 %v1317_v15, %v1316_v13  ;;  %v1321_v24 = vpack.c.bf16 %v1319_v17, %v1318_v16 }
 0x39d   : > { %1445 = vmatpush.bf16.msrb.mxu0 %v1329_v18 }
 0x39e   : > { %v1396_v29 = vunpack.c.l.b16 %v1320_v21  ;;  %v1397_v30 = vunpack.c.h.b16 %v1320_v21  ;;  %v1398_v31 = vunpack.c.l.b16 %v1321_v24  ;;  %v1399_v10 = vunpack.c.h.b16 %v1321_v24  ;;  %1420 = vmatmul.bf16.vlgmr.msra.gmra.mxu3 %v1407_v20 }
 0x3a0   : > { %v1400_v11 = vpack.c.b16 %v1398_v31, %v1396_v29  ;;  %v1401_v32 = vpack.c.b16 %v1399_v10, %v1397_v30  ;;  %1446 = vmatmul.bf16.vlgmr.msrb.gmra.mxu0 %v1407_v20 }
 0x3a2   : > { %1432 = vmatpush.bf16.msra.mxu2 %v1400_v11  ;;  %1458 = vmatpush.bf16.msrb.mxu1 %v1401_v32 }
 0x3a5   : > { %1544 = vmatmul.msk.bf16.vlgmr.msra.gmra.mxu2 %vm560_vm7, %v1408_v33  ;;  %1545 = vmatmul.msk.bf16.vlgmr.msrb.gmra.mxu1 %vm560_vm7, %v1408_v33 }
 0x41d   : > { %v1447_v38 = vpop.f32.mrf.mxu0 }
 0x421   : > { %v1421_v39 = vpop.f32.mrf.mxu3 }
 0x422   : > { %v1460_v41 = vpop.f32.mrf.mxu1 }
 0x423   : > { %v1461_v27 = vadd.f32 %v1460_v41, %v1447_v38 }
 0x425   : > { %1465 = vst [vmem:[%s1674_s16 + $0x18] sm:$0xf] %v1461_v27  ;;  %v1449_v28 = vpop.f32.mrf.mxu0 }
 0x428   : > { %v1434_v49 = vpop.f32.mrf.mxu2 }
 0x429   : > { %v1435_v42 = vadd.f32 %v1434_v49, %v1421_v39  ;;  %v1423_v37 = vpop.f32.mrf.mxu3 }
 0x42a   : > { %v1462_v61 = vpop.f32.mrf.mxu1 }
 0x42b   : > { %1464 = vst [vmem:[%s1674_s16 + $0x10] sm:$0xf] %v1435_v42 }
 0x430   : > { %v1436_v19 = vpop.f32.mrf.mxu2 }
 0x431 PF: > { %s22_s21 = sadd.s32 1, %s1578_s21  }
 0x432   : > { %p19_p4 = scmp.ge.s32.totalorder %s22_s21, 4  }
 0x434   :  { %21 = sbr.rel (!%p19_p4) target bundleno = 1 (0x1), region = 98 }

</bundles_post_ra>
